<compile_context>
chip_gen: v6e
topology: v6e:2x2x1
jax: 0.10.0
libtpu: 0.0.40
codegen_flags: <defaults>
</compile_context>

<pallas_src>
import functools

import numpy as np

import jax
import jax.numpy as jnp
from jax import lax
from jax.experimental import pallas as pl
from jax.experimental.pallas import tpu as pltpu

EPS = 1e-5


def _tree_sum(terms):
    """Pairwise (balanced) sum of a list of arrays."""
    terms = list(terms)
    while len(terms) > 1:
        nxt = []
        for i in range(0, len(terms) - 1, 2):
            nxt.append(terms[i] + terms[i + 1])
        if len(terms) % 2:
            nxt.append(terms[-1])
        terms = nxt
    return terms[0]


def _xblock_kernel(W,
                   x_ref, mask_ref,
                   wskip_ref, gskip_ref, bskip_ref,
                   dw1_ref, pw1_ref, g1_ref, b1_ref,
                   dw2_ref, pw2_ref, g2_ref, b2_ref,
                   o_ref):
    x = x_ref[...]                      # (Cin, N) with N = B*H*W (lane axis)
    N = x.shape[1]

    def swish(v):
        # x * sigmoid(x); sigmoid via tanh identity -> single EUP op
        return v * (0.5 * jnp.tanh(0.5 * v) + 0.5)

    def bn(v, g_ref, b_ref):
        # training-mode BatchNorm2d: single-pass batch stats over the lane
        # axis (= B*H*W) per channel; fused scale/bias; var clamped >= 0.
        inv_n = 1.0 / v.shape[1]
        s1 = jnp.sum(v, axis=1, keepdims=True)          # (C, 1)
        s2 = jnp.sum(v * v, axis=1, keepdims=True)      # (C, 1)
        mean = s1 * inv_n
        var = jnp.maximum(s2 * inv_n - mean * mean, 0.0)
        scale = g_ref[...] * lax.rsqrt(var + EPS)       # (C, 1), EUP rsqrt
        shift = b_ref[...] - mean * scale
        return v * scale + shift

    def pointwise(v, w_ref):
        # 1x1 conv as VPU MACs with pairwise-tree accumulation.
        # v: (Ci, N); w_ref: (Ci, Co, 1) -> (Co, N)
        ci_n = w_ref.shape[0]
        terms = [w_ref[ci] * v[ci:ci + 1, :] for ci in range(ci_n)]
        return _tree_sum(terms)

    def dwconv3x3(v, dw_ref):
        # depthwise 3x3, stride 1, padding 1.  v: (C, N)
        # dw_ref: (9, C, 1) per-tap per-channel weights (tiny, weight-resident)
        # mask_ref: (9, 1, N) channel-independent boundary mask (zero padding);
        # it also zeroes every lane that would wrap across image boundaries,
        # so the lane-axis rotation over the merged B*HW axis is exact.
        terms = [v * dw_ref[4]]                          # center tap (mask==1)
        for t in range(9):
            if t == 4:
                continue
            dh, dwid = t // 3 - 1, t % 3 - 1
            shift = (-(dh * W + dwid)) % N               # static, non-negative
            shifted = pltpu.roll(v, shift, axis=1)       # XLU lane rotate
            terms.append((shifted * mask_ref[t]) * dw_ref[t])
        return _tree_sum(terms)

    # ---- skip branch: 1x1 conv + BN ----
    s = bn(pointwise(x, wskip_ref), gskip_ref, bskip_ref)

    # ---- rep branch ----
    r = swish(x)
    r = bn(pointwise(dwconv3x3(r, dw1_ref), pw1_ref), g1_ref, b1_ref)
    r = swish(r)
    r = bn(pointwise(dwconv3x3(r, dw2_ref), pw2_ref), g2_ref, b2_ref)

    o_ref[...] = s + r                   # single 512-lane dense store


@functools.lru_cache(maxsize=None)
def _tap_masks(B, H, W):
    """(9, 1, B*HW) boundary-validity mask per 3x3 tap (zero padding).

    Computed once per (B, H, W) on the host (numpy) and cached, so it is a
    baked constant of the jitted wrapper rather than per-call work.
    """
    HW = H * W
    p = np.arange(HW)
    hp, wp = p // W, p % W
    m = np.empty((9, 1, B * HW), np.float32)
    for t in range(9):
        dh, dw = t // 3 - 1, t % 3 - 1
        valid = ((hp + dh >= 0) & (hp + dh < H) &
                 (wp + dw >= 0) & (wp + dw < W)).astype(np.float32)
        m[t, 0] = np.tile(valid, B)
    return jnp.asarray(m)


def _xblock_forward(x_nchw, params):
    B, Cin, H, W = x_nchw.shape
    Cout = params["w_skip"].shape[0]
    N = B * H * W

    # (B, Cin, H, W) -> (Cin, B*H*W): channels on sublanes, merged batch +
    # spatial on the lane axis (lane-dense everywhere, incl. the output store).
    x2 = jnp.transpose(x_nchw, (1, 0, 2, 3)).reshape(Cin, N)

    mask = _tap_masks(B, H, W)                               # (9, 1, N) const

    # Depthwise taps as (9, C, 1); pointwise / skip weights as (Ci, Co, 1).
    dw1 = params["dw1"][:, 0].reshape(Cin, 9).T[:, :, None]   # (9, Cin, 1)
    dw2 = params["dw2"][:, 0].reshape(Cout, 9).T[:, :, None]  # (9, Cout, 1)
    wskip = params["w_skip"][:, :, 0, 0].T[:, :, None]        # (Cin, Cout, 1)
    pw1 = params["pw1"][:, :, 0, 0].T[:, :, None]             # (Cin, Cout, 1)
    pw2 = params["pw2"][:, :, 0, 0].T[:, :, None]             # (Cout, Cout, 1)

    def c1(a):                                                # BN params (C,1)
        return a.reshape(-1, 1)

    inputs = (x2, mask,
              wskip, c1(params["g_skip"]), c1(params["b_skip"]),
              dw1, pw1, c1(params["g1"]), c1(params["b1"]),
              dw2, pw2, c1(params["g2"]), c1(params["b2"]))

    # Gridless call, everything resident in VMEM for one invocation: no
    # double-buffering, no pipeline prologue.
    vmem = pl.BlockSpec(memory_space=pltpu.MemorySpace.VMEM)
    out2 = pl.pallas_call(
        functools.partial(_xblock_kernel, W),
        out_shape=jax.ShapeDtypeStruct((Cout, N), jnp.float32),
        in_specs=[vmem] * len(inputs),
        out_specs=vmem,
    )(*inputs)

    # (Cout, B*HW) -> (B, Cout, H, W)
    return jnp.transpose(out2.reshape(Cout, B, H, W), (1, 0, 2, 3))


xblock_pallas = jax.jit(_xblock_forward)


# ---------------- pure-JAX reference (NCHW, lax convs) ----------------
def xblock_ref(x, params):
    def bn(v, g, b):
        mean = v.mean(axis=(0, 2, 3), keepdims=True)
        var = ((v - mean) ** 2).mean(axis=(0, 2, 3), keepdims=True)
        return ((v - mean) / jnp.sqrt(var + EPS) * g[None, :, None, None]
                + b[None, :, None, None])

    def swish(v):
        return v * jax.nn.sigmoid(v)

    def conv1x1(v, w):
        return lax.conv_general_dilated(
            v, w, (1, 1), "VALID",
            dimension_numbers=("NCHW", "OIHW", "NCHW"))

    def dwconv(v, w):
        C = v.shape[1]
        return lax.conv_general_dilated(
            v, w, (1, 1), ((1, 1), (1, 1)),
            dimension_numbers=("NCHW", "OIHW", "NCHW"),
            feature_group_count=C)

    s = bn(conv1x1(x, params["w_skip"]), params["g_skip"], params["b_skip"])
    r = swish(x)
    r = bn(conv1x1(dwconv(r, params["dw1"]), params["pw1"]),
           params["g1"], params["b1"])
    r = swish(r)
    r = bn(conv1x1(dwconv(r, params["dw2"]), params["pw2"]),
           params["g2"], params["b2"])
    return s + r


if __name__ == "__main__":
    key = jax.random.PRNGKey(0)
    B, Cin, Cout, H, W = 2, 4, 8, 16, 16
    ks = jax.random.split(key, 12)

    params = {
        "w_skip": 0.2 * jax.random.normal(ks[0], (Cout, Cin, 1, 1), jnp.float32),
        "g_skip": 1.0 + 0.1 * jax.random.normal(ks[1], (Cout,), jnp.float32),
        "b_skip": 0.1 * jax.random.normal(ks[2], (Cout,), jnp.float32),
        "dw1": 0.2 * jax.random.normal(ks[3], (Cin, 1, 3, 3), jnp.float32),
        "pw1": 0.2 * jax.random.normal(ks[4], (Cout, Cin, 1, 1), jnp.float32),
        "g1": 1.0 + 0.1 * jax.random.normal(ks[5], (Cout,), jnp.float32),
        "b1": 0.1 * jax.random.normal(ks[6], (Cout,), jnp.float32),
        "dw2": 0.2 * jax.random.normal(ks[7], (Cout, 1, 3, 3), jnp.float32),
        "pw2": 0.2 * jax.random.normal(ks[8], (Cout, Cout, 1, 1), jnp.float32),
        "g2": 1.0 + 0.1 * jax.random.normal(ks[9], (Cout,), jnp.float32),
        "b2": 0.1 * jax.random.normal(ks[10], (Cout,), jnp.float32),
    }
    x = jax.random.normal(ks[11], (B, Cin, H, W), jnp.float32)

    out = jax.block_until_ready(xblock_pallas(x, params))
    ref = jax.block_until_ready(xblock_ref(x, params))

    assert out.shape == (B, Cout, H, W), out.shape
    assert bool(jnp.all(jnp.isfinite(out)))
    max_err = float(jnp.max(jnp.abs(out - ref)))
    assert max_err < 1e-2, f"mismatch vs reference: {max_err}"
    print("KERNEL_OK")
</pallas_src>

<mosaic_0001>
module attributes {stable_mosaic.version = 11 : i64} {
  func.func @_xblock_kernel(%arg0: memref<4x512xf32, #tpu.memory_space<vmem>>, %arg1: memref<9x1x512xf32, #tpu.memory_space<vmem>>, %arg2: memref<4x8x1xf32, #tpu.memory_space<vmem>>, %arg3: memref<8x1xf32, #tpu.memory_space<vmem>>, %arg4: memref<8x1xf32, #tpu.memory_space<vmem>>, %arg5: memref<9x4x1xf32, #tpu.memory_space<vmem>>, %arg6: memref<4x8x1xf32, #tpu.memory_space<vmem>>, %arg7: memref<8x1xf32, #tpu.memory_space<vmem>>, %arg8: memref<8x1xf32, #tpu.memory_space<vmem>>, %arg9: memref<9x8x1xf32, #tpu.memory_space<vmem>>, %arg10: memref<8x8x1xf32, #tpu.memory_space<vmem>>, %arg11: memref<8x1xf32, #tpu.memory_space<vmem>>, %arg12: memref<8x1xf32, #tpu.memory_space<vmem>>, %arg13: memref<8x512xf32, #tpu.memory_space<vmem>>) attributes {dimension_semantics = [], scalar_prefetch = 0 : i64, scratch_operands = 0 : i64, tpu.core_type = #tpu.core_type<tc>} {
    %c0 = arith.constant 0 : index
    %c0_0 = arith.constant 0 : index
    %0 = vector.load %arg0[%c0, %c0_0] : memref<4x512xf32, #tpu.memory_space<vmem>>, vector<4x512xf32>
    %c0_1 = arith.constant 0 : index
    %c0_2 = arith.constant 0 : index
    %c0_3 = arith.constant 0 : index
    %1 = vector.load %arg2[%c0_1, %c0_2, %c0_3] : memref<4x8x1xf32, #tpu.memory_space<vmem>>, vector<1x8x1xf32>
    %2 = vector.shape_cast %1 : vector<1x8x1xf32> to vector<8x1xf32>
    %3 = vector.extract_strided_slice %0 {offsets = [0, 0], sizes = [1, 512], strides = [1, 1]} : vector<4x512xf32> to vector<1x512xf32>
    %4 = vector.broadcast %2 : vector<8x1xf32> to vector<8x512xf32>
    %5 = vector.broadcast %3 : vector<1x512xf32> to vector<8x512xf32>
    %6 = arith.mulf %4, %5 : vector<8x512xf32>
    %c1 = arith.constant 1 : index
    %c0_4 = arith.constant 0 : index
    %c0_5 = arith.constant 0 : index
    %7 = vector.load %arg2[%c1, %c0_4, %c0_5] : memref<4x8x1xf32, #tpu.memory_space<vmem>>, vector<1x8x1xf32>
    %8 = vector.shape_cast %7 : vector<1x8x1xf32> to vector<8x1xf32>
    %9 = vector.extract_strided_slice %0 {offsets = [1, 0], sizes = [1, 512], strides = [1, 1]} : vector<4x512xf32> to vector<1x512xf32>
    %10 = vector.broadcast %8 : vector<8x1xf32> to vector<8x512xf32>
    %11 = vector.broadcast %9 : vector<1x512xf32> to vector<8x512xf32>
    %12 = arith.mulf %10, %11 : vector<8x512xf32>
    %c2 = arith.constant 2 : index
    %c0_6 = arith.constant 0 : index
    %c0_7 = arith.constant 0 : index
    %13 = vector.load %arg2[%c2, %c0_6, %c0_7] : memref<4x8x1xf32, #tpu.memory_space<vmem>>, vector<1x8x1xf32>
    %14 = vector.shape_cast %13 : vector<1x8x1xf32> to vector<8x1xf32>
    %15 = vector.extract_strided_slice %0 {offsets = [2, 0], sizes = [1, 512], strides = [1, 1]} : vector<4x512xf32> to vector<1x512xf32>
    %16 = vector.broadcast %14 : vector<8x1xf32> to vector<8x512xf32>
    %17 = vector.broadcast %15 : vector<1x512xf32> to vector<8x512xf32>
    %18 = arith.mulf %16, %17 : vector<8x512xf32>
    %c3 = arith.constant 3 : index
    %c0_8 = arith.constant 0 : index
    %c0_9 = arith.constant 0 : index
    %19 = vector.load %arg2[%c3, %c0_8, %c0_9] : memref<4x8x1xf32, #tpu.memory_space<vmem>>, vector<1x8x1xf32>
    %20 = vector.shape_cast %19 : vector<1x8x1xf32> to vector<8x1xf32>
    %21 = vector.extract_strided_slice %0 {offsets = [3, 0], sizes = [1, 512], strides = [1, 1]} : vector<4x512xf32> to vector<1x512xf32>
    %22 = vector.broadcast %20 : vector<8x1xf32> to vector<8x512xf32>
    %23 = vector.broadcast %21 : vector<1x512xf32> to vector<8x512xf32>
    %24 = arith.mulf %22, %23 : vector<8x512xf32>
    %25 = arith.addf %6, %12 : vector<8x512xf32>
    %26 = arith.addf %18, %24 : vector<8x512xf32>
    %27 = arith.addf %25, %26 : vector<8x512xf32>
    %cst = arith.constant dense<0.000000e+00> : vector<8xf32>
    %28 = vector.multi_reduction <add>, %27, %cst [1] : vector<8x512xf32> to vector<8xf32>
    %29 = vector.shape_cast %28 : vector<8xf32> to vector<8x1xf32>
    %30 = arith.mulf %27, %27 : vector<8x512xf32>
    %cst_10 = arith.constant dense<0.000000e+00> : vector<8xf32>
    %31 = vector.multi_reduction <add>, %30, %cst_10 [1] : vector<8x512xf32> to vector<8xf32>
    %32 = vector.shape_cast %31 : vector<8xf32> to vector<8x1xf32>
    %cst_11 = arith.constant 0.001953125 : f32
    %33 = vector.broadcast %cst_11 : f32 to vector<8x1xf32>
    %34 = arith.mulf %29, %33 : vector<8x1xf32>
    %cst_12 = arith.constant 0.001953125 : f32
    %35 = vector.broadcast %cst_12 : f32 to vector<8x1xf32>
    %36 = arith.mulf %32, %35 : vector<8x1xf32>
    %37 = arith.mulf %34, %34 : vector<8x1xf32>
    %38 = arith.subf %36, %37 : vector<8x1xf32>
    %cst_13 = arith.constant 0.000000e+00 : f32
    %39 = vector.broadcast %cst_13 : f32 to vector<8x1xf32>
    %40 = arith.maximumf %38, %39 : vector<8x1xf32>
    %c0_14 = arith.constant 0 : index
    %c0_15 = arith.constant 0 : index
    %41 = vector.load %arg3[%c0_14, %c0_15] : memref<8x1xf32, #tpu.memory_space<vmem>>, vector<8x1xf32>
    %cst_16 = arith.constant 9.99999974E-6 : f32
    %42 = vector.broadcast %cst_16 : f32 to vector<8x1xf32>
    %43 = arith.addf %40, %42 : vector<8x1xf32>
    %44 = math.rsqrt %43 : vector<8x1xf32>
    %45 = arith.mulf %41, %44 : vector<8x1xf32>
    %c0_17 = arith.constant 0 : index
    %c0_18 = arith.constant 0 : index
    %46 = vector.load %arg4[%c0_17, %c0_18] : memref<8x1xf32, #tpu.memory_space<vmem>>, vector<8x1xf32>
    %47 = arith.mulf %34, %45 : vector<8x1xf32>
    %48 = arith.subf %46, %47 : vector<8x1xf32>
    %49 = vector.broadcast %45 : vector<8x1xf32> to vector<8x512xf32>
    %50 = arith.mulf %27, %49 : vector<8x512xf32>
    %51 = vector.broadcast %48 : vector<8x1xf32> to vector<8x512xf32>
    %52 = arith.addf %50, %51 : vector<8x512xf32>
    %cst_19 = arith.constant 5.000000e-01 : f32
    %53 = vector.broadcast %cst_19 : f32 to vector<4x512xf32>
    %54 = arith.mulf %53, %0 : vector<4x512xf32>
    %55 = math.tanh %54 : vector<4x512xf32>
    %cst_20 = arith.constant 5.000000e-01 : f32
    %56 = vector.broadcast %cst_20 : f32 to vector<4x512xf32>
    %57 = arith.mulf %56, %55 : vector<4x512xf32>
    %cst_21 = arith.constant 5.000000e-01 : f32
    %58 = vector.broadcast %cst_21 : f32 to vector<4x512xf32>
    %59 = arith.addf %57, %58 : vector<4x512xf32>
    %60 = arith.mulf %0, %59 : vector<4x512xf32>
    %c4 = arith.constant 4 : index
    %c0_22 = arith.constant 0 : index
    %c0_23 = arith.constant 0 : index
    %61 = vector.load %arg5[%c4, %c0_22, %c0_23] : memref<9x4x1xf32, #tpu.memory_space<vmem>>, vector<1x4x1xf32>
    %62 = vector.shape_cast %61 : vector<1x4x1xf32> to vector<4x1xf32>
    %63 = vector.broadcast %62 : vector<4x1xf32> to vector<4x512xf32>
    %64 = arith.mulf %60, %63 : vector<4x512xf32>
    %c17_i32 = arith.constant 17 : i32
    %65 = tpu.dynamic_rotate %60 by %c17_i32 dim 1 : vector<4x512xf32>, i32 -> vector<4x512xf32>
    %c0_24 = arith.constant 0 : index
    %c0_25 = arith.constant 0 : index
    %c0_26 = arith.constant 0 : index
    %66 = vector.load %arg1[%c0_24, %c0_25, %c0_26] : memref<9x1x512xf32, #tpu.memory_space<vmem>>, vector<1x1x512xf32>
    %67 = vector.shape_cast %66 : vector<1x1x512xf32> to vector<1x512xf32>
    %68 = vector.broadcast %67 : vector<1x512xf32> to vector<4x512xf32>
    %69 = arith.mulf %65, %68 : vector<4x512xf32>
    %c0_27 = arith.constant 0 : index
    %c0_28 = arith.constant 0 : index
    %c0_29 = arith.constant 0 : index
    %70 = vector.load %arg5[%c0_27, %c0_28, %c0_29] : memref<9x4x1xf32, #tpu.memory_space<vmem>>, vector<1x4x1xf32>
    %71 = vector.shape_cast %70 : vector<1x4x1xf32> to vector<4x1xf32>
    %72 = vector.broadcast %71 : vector<4x1xf32> to vector<4x512xf32>
    %73 = arith.mulf %69, %72 : vector<4x512xf32>
    %c16_i32 = arith.constant 16 : i32
    %74 = tpu.dynamic_rotate %60 by %c16_i32 dim 1 : vector<4x512xf32>, i32 -> vector<4x512xf32>
    %c1_30 = arith.constant 1 : index
    %c0_31 = arith.constant 0 : index
    %c0_32 = arith.constant 0 : index
    %75 = vector.load %arg1[%c1_30, %c0_31, %c0_32] : memref<9x1x512xf32, #tpu.memory_space<vmem>>, vector<1x1x512xf32>
    %76 = vector.shape_cast %75 : vector<1x1x512xf32> to vector<1x512xf32>
    %77 = vector.broadcast %76 : vector<1x512xf32> to vector<4x512xf32>
    %78 = arith.mulf %74, %77 : vector<4x512xf32>
    %c1_33 = arith.constant 1 : index
    %c0_34 = arith.constant 0 : index
    %c0_35 = arith.constant 0 : index
    %79 = vector.load %arg5[%c1_33, %c0_34, %c0_35] : memref<9x4x1xf32, #tpu.memory_space<vmem>>, vector<1x4x1xf32>
    %80 = vector.shape_cast %79 : vector<1x4x1xf32> to vector<4x1xf32>
    %81 = vector.broadcast %80 : vector<4x1xf32> to vector<4x512xf32>
    %82 = arith.mulf %78, %81 : vector<4x512xf32>
    %c15_i32 = arith.constant 15 : i32
    %83 = tpu.dynamic_rotate %60 by %c15_i32 dim 1 : vector<4x512xf32>, i32 -> vector<4x512xf32>
    %c2_36 = arith.constant 2 : index
    %c0_37 = arith.constant 0 : index
    %c0_38 = arith.constant 0 : index
    %84 = vector.load %arg1[%c2_36, %c0_37, %c0_38] : memref<9x1x512xf32, #tpu.memory_space<vmem>>, vector<1x1x512xf32>
    %85 = vector.shape_cast %84 : vector<1x1x512xf32> to vector<1x512xf32>
    %86 = vector.broadcast %85 : vector<1x512xf32> to vector<4x512xf32>
    %87 = arith.mulf %83, %86 : vector<4x512xf32>
    %c2_39 = arith.constant 2 : index
    %c0_40 = arith.constant 0 : index
    %c0_41 = arith.constant 0 : index
    %88 = vector.load %arg5[%c2_39, %c0_40, %c0_41] : memref<9x4x1xf32, #tpu.memory_space<vmem>>, vector<1x4x1xf32>
    %89 = vector.shape_cast %88 : vector<1x4x1xf32> to vector<4x1xf32>
    %90 = vector.broadcast %89 : vector<4x1xf32> to vector<4x512xf32>
    %91 = arith.mulf %87, %90 : vector<4x512xf32>
    %c1_i32 = arith.constant 1 : i32
    %92 = tpu.dynamic_rotate %60 by %c1_i32 dim 1 : vector<4x512xf32>, i32 -> vector<4x512xf32>
    %c3_42 = arith.constant 3 : index
    %c0_43 = arith.constant 0 : index
    %c0_44 = arith.constant 0 : index
    %93 = vector.load %arg1[%c3_42, %c0_43, %c0_44] : memref<9x1x512xf32, #tpu.memory_space<vmem>>, vector<1x1x512xf32>
    %94 = vector.shape_cast %93 : vector<1x1x512xf32> to vector<1x512xf32>
    %95 = vector.broadcast %94 : vector<1x512xf32> to vector<4x512xf32>
    %96 = arith.mulf %92, %95 : vector<4x512xf32>
    %c3_45 = arith.constant 3 : index
    %c0_46 = arith.constant 0 : index
    %c0_47 = arith.constant 0 : index
    %97 = vector.load %arg5[%c3_45, %c0_46, %c0_47] : memref<9x4x1xf32, #tpu.memory_space<vmem>>, vector<1x4x1xf32>
    %98 = vector.shape_cast %97 : vector<1x4x1xf32> to vector<4x1xf32>
    %99 = vector.broadcast %98 : vector<4x1xf32> to vector<4x512xf32>
    %100 = arith.mulf %96, %99 : vector<4x512xf32>
    %c511_i32 = arith.constant 511 : i32
    %101 = tpu.dynamic_rotate %60 by %c511_i32 dim 1 : vector<4x512xf32>, i32 -> vector<4x512xf32>
    %c5 = arith.constant 5 : index
    %c0_48 = arith.constant 0 : index
    %c0_49 = arith.constant 0 : index
    %102 = vector.load %arg1[%c5, %c0_48, %c0_49] : memref<9x1x512xf32, #tpu.memory_space<vmem>>, vector<1x1x512xf32>
    %103 = vector.shape_cast %102 : vector<1x1x512xf32> to vector<1x512xf32>
    %104 = vector.broadcast %103 : vector<1x512xf32> to vector<4x512xf32>
    %105 = arith.mulf %101, %104 : vector<4x512xf32>
    %c5_50 = arith.constant 5 : index
    %c0_51 = arith.constant 0 : index
    %c0_52 = arith.constant 0 : index
    %106 = vector.load %arg5[%c5_50, %c0_51, %c0_52] : memref<9x4x1xf32, #tpu.memory_space<vmem>>, vector<1x4x1xf32>
    %107 = vector.shape_cast %106 : vector<1x4x1xf32> to vector<4x1xf32>
    %108 = vector.broadcast %107 : vector<4x1xf32> to vector<4x512xf32>
    %109 = arith.mulf %105, %108 : vector<4x512xf32>
    %c497_i32 = arith.constant 497 : i32
    %110 = tpu.dynamic_rotate %60 by %c497_i32 dim 1 : vector<4x512xf32>, i32 -> vector<4x512xf32>
    %c6 = arith.constant 6 : index
    %c0_53 = arith.constant 0 : index
    %c0_54 = arith.constant 0 : index
    %111 = vector.load %arg1[%c6, %c0_53, %c0_54] : memref<9x1x512xf32, #tpu.memory_space<vmem>>, vector<1x1x512xf32>
    %112 = vector.shape_cast %111 : vector<1x1x512xf32> to vector<1x512xf32>
    %113 = vector.broadcast %112 : vector<1x512xf32> to vector<4x512xf32>
    %114 = arith.mulf %110, %113 : vector<4x512xf32>
    %c6_55 = arith.constant 6 : index
    %c0_56 = arith.constant 0 : index
    %c0_57 = arith.constant 0 : index
    %115 = vector.load %arg5[%c6_55, %c0_56, %c0_57] : memref<9x4x1xf32, #tpu.memory_space<vmem>>, vector<1x4x1xf32>
    %116 = vector.shape_cast %115 : vector<1x4x1xf32> to vector<4x1xf32>
    %117 = vector.broadcast %116 : vector<4x1xf32> to vector<4x512xf32>
    %118 = arith.mulf %114, %117 : vector<4x512xf32>
    %c496_i32 = arith.constant 496 : i32
    %119 = tpu.dynamic_rotate %60 by %c496_i32 dim 1 : vector<4x512xf32>, i32 -> vector<4x512xf32>
    %c7 = arith.constant 7 : index
    %c0_58 = arith.constant 0 : index
    %c0_59 = arith.constant 0 : index
    %120 = vector.load %arg1[%c7, %c0_58, %c0_59] : memref<9x1x512xf32, #tpu.memory_space<vmem>>, vector<1x1x512xf32>
    %121 = vector.shape_cast %120 : vector<1x1x512xf32> to vector<1x512xf32>
    %122 = vector.broadcast %121 : vector<1x512xf32> to vector<4x512xf32>
    %123 = arith.mulf %119, %122 : vector<4x512xf32>
    %c7_60 = arith.constant 7 : index
    %c0_61 = arith.constant 0 : index
    %c0_62 = arith.constant 0 : index
    %124 = vector.load %arg5[%c7_60, %c0_61, %c0_62] : memref<9x4x1xf32, #tpu.memory_space<vmem>>, vector<1x4x1xf32>
    %125 = vector.shape_cast %124 : vector<1x4x1xf32> to vector<4x1xf32>
    %126 = vector.broadcast %125 : vector<4x1xf32> to vector<4x512xf32>
    %127 = arith.mulf %123, %126 : vector<4x512xf32>
    %c495_i32 = arith.constant 495 : i32
    %128 = tpu.dynamic_rotate %60 by %c495_i32 dim 1 : vector<4x512xf32>, i32 -> vector<4x512xf32>
    %c8 = arith.constant 8 : index
    %c0_63 = arith.constant 0 : index
    %c0_64 = arith.constant 0 : index
    %129 = vector.load %arg1[%c8, %c0_63, %c0_64] : memref<9x1x512xf32, #tpu.memory_space<vmem>>, vector<1x1x512xf32>
    %130 = vector.shape_cast %129 : vector<1x1x512xf32> to vector<1x512xf32>
    %131 = vector.broadcast %130 : vector<1x512xf32> to vector<4x512xf32>
    %132 = arith.mulf %128, %131 : vector<4x512xf32>
    %c8_65 = arith.constant 8 : index
    %c0_66 = arith.constant 0 : index
    %c0_67 = arith.constant 0 : index
    %133 = vector.load %arg5[%c8_65, %c0_66, %c0_67] : memref<9x4x1xf32, #tpu.memory_space<vmem>>, vector<1x4x1xf32>
    %134 = vector.shape_cast %133 : vector<1x4x1xf32> to vector<4x1xf32>
    %135 = vector.broadcast %134 : vector<4x1xf32> to vector<4x512xf32>
    %136 = arith.mulf %132, %135 : vector<4x512xf32>
    %137 = arith.addf %64, %73 : vector<4x512xf32>
    %138 = arith.addf %82, %91 : vector<4x512xf32>
    %139 = arith.addf %100, %109 : vector<4x512xf32>
    %140 = arith.addf %118, %127 : vector<4x512xf32>
    %141 = arith.addf %137, %138 : vector<4x512xf32>
    %142 = arith.addf %139, %140 : vector<4x512xf32>
    %143 = arith.addf %141, %142 : vector<4x512xf32>
    %144 = arith.addf %143, %136 : vector<4x512xf32>
    %c0_68 = arith.constant 0 : index
    %c0_69 = arith.constant 0 : index
    %c0_70 = arith.constant 0 : index
    %145 = vector.load %arg6[%c0_68, %c0_69, %c0_70] : memref<4x8x1xf32, #tpu.memory_space<vmem>>, vector<1x8x1xf32>
    %146 = vector.shape_cast %145 : vector<1x8x1xf32> to vector<8x1xf32>
    %147 = vector.extract_strided_slice %144 {offsets = [0, 0], sizes = [1, 512], strides = [1, 1]} : vector<4x512xf32> to vector<1x512xf32>
    %148 = vector.broadcast %146 : vector<8x1xf32> to vector<8x512xf32>
    %149 = vector.broadcast %147 : vector<1x512xf32> to vector<8x512xf32>
    %150 = arith.mulf %148, %149 : vector<8x512xf32>
    %c1_71 = arith.constant 1 : index
    %c0_72 = arith.constant 0 : index
    %c0_73 = arith.constant 0 : index
    %151 = vector.load %arg6[%c1_71, %c0_72, %c0_73] : memref<4x8x1xf32, #tpu.memory_space<vmem>>, vector<1x8x1xf32>
    %152 = vector.shape_cast %151 : vector<1x8x1xf32> to vector<8x1xf32>
    %153 = vector.extract_strided_slice %144 {offsets = [1, 0], sizes = [1, 512], strides = [1, 1]} : vector<4x512xf32> to vector<1x512xf32>
    %154 = vector.broadcast %152 : vector<8x1xf32> to vector<8x512xf32>
    %155 = vector.broadcast %153 : vector<1x512xf32> to vector<8x512xf32>
    %156 = arith.mulf %154, %155 : vector<8x512xf32>
    %c2_74 = arith.constant 2 : index
    %c0_75 = arith.constant 0 : index
    %c0_76 = arith.constant 0 : index
    %157 = vector.load %arg6[%c2_74, %c0_75, %c0_76] : memref<4x8x1xf32, #tpu.memory_space<vmem>>, vector<1x8x1xf32>
    %158 = vector.shape_cast %157 : vector<1x8x1xf32> to vector<8x1xf32>
    %159 = vector.extract_strided_slice %144 {offsets = [2, 0], sizes = [1, 512], strides = [1, 1]} : vector<4x512xf32> to vector<1x512xf32>
    %160 = vector.broadcast %158 : vector<8x1xf32> to vector<8x512xf32>
    %161 = vector.broadcast %159 : vector<1x512xf32> to vector<8x512xf32>
    %162 = arith.mulf %160, %161 : vector<8x512xf32>
    %c3_77 = arith.constant 3 : index
    %c0_78 = arith.constant 0 : index
    %c0_79 = arith.constant 0 : index
    %163 = vector.load %arg6[%c3_77, %c0_78, %c0_79] : memref<4x8x1xf32, #tpu.memory_space<vmem>>, vector<1x8x1xf32>
    %164 = vector.shape_cast %163 : vector<1x8x1xf32> to vector<8x1xf32>
    %165 = vector.extract_strided_slice %144 {offsets = [3, 0], sizes = [1, 512], strides = [1, 1]} : vector<4x512xf32> to vector<1x512xf32>
    %166 = vector.broadcast %164 : vector<8x1xf32> to vector<8x512xf32>
    %167 = vector.broadcast %165 : vector<1x512xf32> to vector<8x512xf32>
    %168 = arith.mulf %166, %167 : vector<8x512xf32>
    %169 = arith.addf %150, %156 : vector<8x512xf32>
    %170 = arith.addf %162, %168 : vector<8x512xf32>
    %171 = arith.addf %169, %170 : vector<8x512xf32>
    %cst_80 = arith.constant dense<0.000000e+00> : vector<8xf32>
    %172 = vector.multi_reduction <add>, %171, %cst_80 [1] : vector<8x512xf32> to vector<8xf32>
    %173 = vector.shape_cast %172 : vector<8xf32> to vector<8x1xf32>
    %174 = arith.mulf %171, %171 : vector<8x512xf32>
    %cst_81 = arith.constant dense<0.000000e+00> : vector<8xf32>
    %175 = vector.multi_reduction <add>, %174, %cst_81 [1] : vector<8x512xf32> to vector<8xf32>
    %176 = vector.shape_cast %175 : vector<8xf32> to vector<8x1xf32>
    %cst_82 = arith.constant 0.001953125 : f32
    %177 = vector.broadcast %cst_82 : f32 to vector<8x1xf32>
    %178 = arith.mulf %173, %177 : vector<8x1xf32>
    %cst_83 = arith.constant 0.001953125 : f32
    %179 = vector.broadcast %cst_83 : f32 to vector<8x1xf32>
    %180 = arith.mulf %176, %179 : vector<8x1xf32>
    %181 = arith.mulf %178, %178 : vector<8x1xf32>
    %182 = arith.subf %180, %181 : vector<8x1xf32>
    %cst_84 = arith.constant 0.000000e+00 : f32
    %183 = vector.broadcast %cst_84 : f32 to vector<8x1xf32>
    %184 = arith.maximumf %182, %183 : vector<8x1xf32>
    %c0_85 = arith.constant 0 : index
    %c0_86 = arith.constant 0 : index
    %185 = vector.load %arg7[%c0_85, %c0_86] : memref<8x1xf32, #tpu.memory_space<vmem>>, vector<8x1xf32>
    %cst_87 = arith.constant 9.99999974E-6 : f32
    %186 = vector.broadcast %cst_87 : f32 to vector<8x1xf32>
    %187 = arith.addf %184, %186 : vector<8x1xf32>
    %188 = math.rsqrt %187 : vector<8x1xf32>
    %189 = arith.mulf %185, %188 : vector<8x1xf32>
    %c0_88 = arith.constant 0 : index
    %c0_89 = arith.constant 0 : index
    %190 = vector.load %arg8[%c0_88, %c0_89] : memref<8x1xf32, #tpu.memory_space<vmem>>, vector<8x1xf32>
    %191 = arith.mulf %178, %189 : vector<8x1xf32>
    %192 = arith.subf %190, %191 : vector<8x1xf32>
    %193 = vector.broadcast %189 : vector<8x1xf32> to vector<8x512xf32>
    %194 = arith.mulf %171, %193 : vector<8x512xf32>
    %195 = vector.broadcast %192 : vector<8x1xf32> to vector<8x512xf32>
    %196 = arith.addf %194, %195 : vector<8x512xf32>
    %cst_90 = arith.constant 5.000000e-01 : f32
    %197 = vector.broadcast %cst_90 : f32 to vector<8x512xf32>
    %198 = arith.mulf %197, %196 : vector<8x512xf32>
    %199 = math.tanh %198 : vector<8x512xf32>
    %cst_91 = arith.constant 5.000000e-01 : f32
    %200 = vector.broadcast %cst_91 : f32 to vector<8x512xf32>
    %201 = arith.mulf %200, %199 : vector<8x512xf32>
    %cst_92 = arith.constant 5.000000e-01 : f32
    %202 = vector.broadcast %cst_92 : f32 to vector<8x512xf32>
    %203 = arith.addf %201, %202 : vector<8x512xf32>
    %204 = arith.mulf %196, %203 : vector<8x512xf32>
    %c4_93 = arith.constant 4 : index
    %c0_94 = arith.constant 0 : index
    %c0_95 = arith.constant 0 : index
    %205 = vector.load %arg9[%c4_93, %c0_94, %c0_95] : memref<9x8x1xf32, #tpu.memory_space<vmem>>, vector<1x8x1xf32>
    %206 = vector.shape_cast %205 : vector<1x8x1xf32> to vector<8x1xf32>
    %207 = vector.broadcast %206 : vector<8x1xf32> to vector<8x512xf32>
    %208 = arith.mulf %204, %207 : vector<8x512xf32>
    %c17_i32_96 = arith.constant 17 : i32
    %209 = tpu.dynamic_rotate %204 by %c17_i32_96 dim 1 : vector<8x512xf32>, i32 -> vector<8x512xf32>
    %c0_97 = arith.constant 0 : index
    %c0_98 = arith.constant 0 : index
    %c0_99 = arith.constant 0 : index
    %210 = vector.load %arg1[%c0_97, %c0_98, %c0_99] : memref<9x1x512xf32, #tpu.memory_space<vmem>>, vector<1x1x512xf32>
    %211 = vector.shape_cast %210 : vector<1x1x512xf32> to vector<1x512xf32>
    %212 = vector.broadcast %211 : vector<1x512xf32> to vector<8x512xf32>
    %213 = arith.mulf %209, %212 : vector<8x512xf32>
    %c0_100 = arith.constant 0 : index
    %c0_101 = arith.constant 0 : index
    %c0_102 = arith.constant 0 : index
    %214 = vector.load %arg9[%c0_100, %c0_101, %c0_102] : memref<9x8x1xf32, #tpu.memory_space<vmem>>, vector<1x8x1xf32>
    %215 = vector.shape_cast %214 : vector<1x8x1xf32> to vector<8x1xf32>
    %216 = vector.broadcast %215 : vector<8x1xf32> to vector<8x512xf32>
    %217 = arith.mulf %213, %216 : vector<8x512xf32>
    %c16_i32_103 = arith.constant 16 : i32
    %218 = tpu.dynamic_rotate %204 by %c16_i32_103 dim 1 : vector<8x512xf32>, i32 -> vector<8x512xf32>
    %c1_104 = arith.constant 1 : index
    %c0_105 = arith.constant 0 : index
    %c0_106 = arith.constant 0 : index
    %219 = vector.load %arg1[%c1_104, %c0_105, %c0_106] : memref<9x1x512xf32, #tpu.memory_space<vmem>>, vector<1x1x512xf32>
    %220 = vector.shape_cast %219 : vector<1x1x512xf32> to vector<1x512xf32>
    %221 = vector.broadcast %220 : vector<1x512xf32> to vector<8x512xf32>
    %222 = arith.mulf %218, %221 : vector<8x512xf32>
    %c1_107 = arith.constant 1 : index
    %c0_108 = arith.constant 0 : index
    %c0_109 = arith.constant 0 : index
    %223 = vector.load %arg9[%c1_107, %c0_108, %c0_109] : memref<9x8x1xf32, #tpu.memory_space<vmem>>, vector<1x8x1xf32>
    %224 = vector.shape_cast %223 : vector<1x8x1xf32> to vector<8x1xf32>
    %225 = vector.broadcast %224 : vector<8x1xf32> to vector<8x512xf32>
    %226 = arith.mulf %222, %225 : vector<8x512xf32>
    %c15_i32_110 = arith.constant 15 : i32
    %227 = tpu.dynamic_rotate %204 by %c15_i32_110 dim 1 : vector<8x512xf32>, i32 -> vector<8x512xf32>
    %c2_111 = arith.constant 2 : index
    %c0_112 = arith.constant 0 : index
    %c0_113 = arith.constant 0 : index
    %228 = vector.load %arg1[%c2_111, %c0_112, %c0_113] : memref<9x1x512xf32, #tpu.memory_space<vmem>>, vector<1x1x512xf32>
    %229 = vector.shape_cast %228 : vector<1x1x512xf32> to vector<1x512xf32>
    %230 = vector.broadcast %229 : vector<1x512xf32> to vector<8x512xf32>
    %231 = arith.mulf %227, %230 : vector<8x512xf32>
    %c2_114 = arith.constant 2 : index
    %c0_115 = arith.constant 0 : index
    %c0_116 = arith.constant 0 : index
    %232 = vector.load %arg9[%c2_114, %c0_115, %c0_116] : memref<9x8x1xf32, #tpu.memory_space<vmem>>, vector<1x8x1xf32>
    %233 = vector.shape_cast %232 : vector<1x8x1xf32> to vector<8x1xf32>
    %234 = vector.broadcast %233 : vector<8x1xf32> to vector<8x512xf32>
    %235 = arith.mulf %231, %234 : vector<8x512xf32>
    %c1_i32_117 = arith.constant 1 : i32
    %236 = tpu.dynamic_rotate %204 by %c1_i32_117 dim 1 : vector<8x512xf32>, i32 -> vector<8x512xf32>
    %c3_118 = arith.constant 3 : index
    %c0_119 = arith.constant 0 : index
    %c0_120 = arith.constant 0 : index
    %237 = vector.load %arg1[%c3_118, %c0_119, %c0_120] : memref<9x1x512xf32, #tpu.memory_space<vmem>>, vector<1x1x512xf32>
    %238 = vector.shape_cast %237 : vector<1x1x512xf32> to vector<1x512xf32>
    %239 = vector.broadcast %238 : vector<1x512xf32> to vector<8x512xf32>
    %240 = arith.mulf %236, %239 : vector<8x512xf32>
    %c3_121 = arith.constant 3 : index
    %c0_122 = arith.constant 0 : index
    %c0_123 = arith.constant 0 : index
    %241 = vector.load %arg9[%c3_121, %c0_122, %c0_123] : memref<9x8x1xf32, #tpu.memory_space<vmem>>, vector<1x8x1xf32>
    %242 = vector.shape_cast %241 : vector<1x8x1xf32> to vector<8x1xf32>
    %243 = vector.broadcast %242 : vector<8x1xf32> to vector<8x512xf32>
    %244 = arith.mulf %240, %243 : vector<8x512xf32>
    %c511_i32_124 = arith.constant 511 : i32
    %245 = tpu.dynamic_rotate %204 by %c511_i32_124 dim 1 : vector<8x512xf32>, i32 -> vector<8x512xf32>
    %c5_125 = arith.constant 5 : index
    %c0_126 = arith.constant 0 : index
    %c0_127 = arith.constant 0 : index
    %246 = vector.load %arg1[%c5_125, %c0_126, %c0_127] : memref<9x1x512xf32, #tpu.memory_space<vmem>>, vector<1x1x512xf32>
    %247 = vector.shape_cast %246 : vector<1x1x512xf32> to vector<1x512xf32>
    %248 = vector.broadcast %247 : vector<1x512xf32> to vector<8x512xf32>
    %249 = arith.mulf %245, %248 : vector<8x512xf32>
    %c5_128 = arith.constant 5 : index
    %c0_129 = arith.constant 0 : index
    %c0_130 = arith.constant 0 : index
    %250 = vector.load %arg9[%c5_128, %c0_129, %c0_130] : memref<9x8x1xf32, #tpu.memory_space<vmem>>, vector<1x8x1xf32>
    %251 = vector.shape_cast %250 : vector<1x8x1xf32> to vector<8x1xf32>
    %252 = vector.broadcast %251 : vector<8x1xf32> to vector<8x512xf32>
    %253 = arith.mulf %249, %252 : vector<8x512xf32>
    %c497_i32_131 = arith.constant 497 : i32
    %254 = tpu.dynamic_rotate %204 by %c497_i32_131 dim 1 : vector<8x512xf32>, i32 -> vector<8x512xf32>
    %c6_132 = arith.constant 6 : index
    %c0_133 = arith.constant 0 : index
    %c0_134 = arith.constant 0 : index
    %255 = vector.load %arg1[%c6_132, %c0_133, %c0_134] : memref<9x1x512xf32, #tpu.memory_space<vmem>>, vector<1x1x512xf32>
    %256 = vector.shape_cast %255 : vector<1x1x512xf32> to vector<1x512xf32>
    %257 = vector.broadcast %256 : vector<1x512xf32> to vector<8x512xf32>
    %258 = arith.mulf %254, %257 : vector<8x512xf32>
    %c6_135 = arith.constant 6 : index
    %c0_136 = arith.constant 0 : index
    %c0_137 = arith.constant 0 : index
    %259 = vector.load %arg9[%c6_135, %c0_136, %c0_137] : memref<9x8x1xf32, #tpu.memory_space<vmem>>, vector<1x8x1xf32>
    %260 = vector.shape_cast %259 : vector<1x8x1xf32> to vector<8x1xf32>
    %261 = vector.broadcast %260 : vector<8x1xf32> to vector<8x512xf32>
    %262 = arith.mulf %258, %261 : vector<8x512xf32>
    %c496_i32_138 = arith.constant 496 : i32
    %263 = tpu.dynamic_rotate %204 by %c496_i32_138 dim 1 : vector<8x512xf32>, i32 -> vector<8x512xf32>
    %c7_139 = arith.constant 7 : index
    %c0_140 = arith.constant 0 : index
    %c0_141 = arith.constant 0 : index
    %264 = vector.load %arg1[%c7_139, %c0_140, %c0_141] : memref<9x1x512xf32, #tpu.memory_space<vmem>>, vector<1x1x512xf32>
    %265 = vector.shape_cast %264 : vector<1x1x512xf32> to vector<1x512xf32>
    %266 = vector.broadcast %265 : vector<1x512xf32> to vector<8x512xf32>
    %267 = arith.mulf %263, %266 : vector<8x512xf32>
    %c7_142 = arith.constant 7 : index
    %c0_143 = arith.constant 0 : index
    %c0_144 = arith.constant 0 : index
    %268 = vector.load %arg9[%c7_142, %c0_143, %c0_144] : memref<9x8x1xf32, #tpu.memory_space<vmem>>, vector<1x8x1xf32>
    %269 = vector.shape_cast %268 : vector<1x8x1xf32> to vector<8x1xf32>
    %270 = vector.broadcast %269 : vector<8x1xf32> to vector<8x512xf32>
    %271 = arith.mulf %267, %270 : vector<8x512xf32>
    %c495_i32_145 = arith.constant 495 : i32
    %272 = tpu.dynamic_rotate %204 by %c495_i32_145 dim 1 : vector<8x512xf32>, i32 -> vector<8x512xf32>
    %c8_146 = arith.constant 8 : index
    %c0_147 = arith.constant 0 : index
    %c0_148 = arith.constant 0 : index
    %273 = vector.load %arg1[%c8_146, %c0_147, %c0_148] : memref<9x1x512xf32, #tpu.memory_space<vmem>>, vector<1x1x512xf32>
    %274 = vector.shape_cast %273 : vector<1x1x512xf32> to vector<1x512xf32>
    %275 = vector.broadcast %274 : vector<1x512xf32> to vector<8x512xf32>
    %276 = arith.mulf %272, %275 : vector<8x512xf32>
    %c8_149 = arith.constant 8 : index
    %c0_150 = arith.constant 0 : index
    %c0_151 = arith.constant 0 : index
    %277 = vector.load %arg9[%c8_149, %c0_150, %c0_151] : memref<9x8x1xf32, #tpu.memory_space<vmem>>, vector<1x8x1xf32>
    %278 = vector.shape_cast %277 : vector<1x8x1xf32> to vector<8x1xf32>
    %279 = vector.broadcast %278 : vector<8x1xf32> to vector<8x512xf32>
    %280 = arith.mulf %276, %279 : vector<8x512xf32>
    %281 = arith.addf %208, %217 : vector<8x512xf32>
    %282 = arith.addf %226, %235 : vector<8x512xf32>
    %283 = arith.addf %244, %253 : vector<8x512xf32>
    %284 = arith.addf %262, %271 : vector<8x512xf32>
    %285 = arith.addf %281, %282 : vector<8x512xf32>
    %286 = arith.addf %283, %284 : vector<8x512xf32>
    %287 = arith.addf %285, %286 : vector<8x512xf32>
    %288 = arith.addf %287, %280 : vector<8x512xf32>
    %c0_152 = arith.constant 0 : index
    %c0_153 = arith.constant 0 : index
    %c0_154 = arith.constant 0 : index
    %289 = vector.load %arg10[%c0_152, %c0_153, %c0_154] : memref<8x8x1xf32, #tpu.memory_space<vmem>>, vector<1x8x1xf32>
    %290 = vector.shape_cast %289 : vector<1x8x1xf32> to vector<8x1xf32>
    %291 = vector.extract_strided_slice %288 {offsets = [0, 0], sizes = [1, 512], strides = [1, 1]} : vector<8x512xf32> to vector<1x512xf32>
    %292 = vector.broadcast %290 : vector<8x1xf32> to vector<8x512xf32>
    %293 = vector.broadcast %291 : vector<1x512xf32> to vector<8x512xf32>
    %294 = arith.mulf %292, %293 : vector<8x512xf32>
    %c1_155 = arith.constant 1 : index
    %c0_156 = arith.constant 0 : index
    %c0_157 = arith.constant 0 : index
    %295 = vector.load %arg10[%c1_155, %c0_156, %c0_157] : memref<8x8x1xf32, #tpu.memory_space<vmem>>, vector<1x8x1xf32>
    %296 = vector.shape_cast %295 : vector<1x8x1xf32> to vector<8x1xf32>
    %297 = vector.extract_strided_slice %288 {offsets = [1, 0], sizes = [1, 512], strides = [1, 1]} : vector<8x512xf32> to vector<1x512xf32>
    %298 = vector.broadcast %296 : vector<8x1xf32> to vector<8x512xf32>
    %299 = vector.broadcast %297 : vector<1x512xf32> to vector<8x512xf32>
    %300 = arith.mulf %298, %299 : vector<8x512xf32>
    %c2_158 = arith.constant 2 : index
    %c0_159 = arith.constant 0 : index
    %c0_160 = arith.constant 0 : index
    %301 = vector.load %arg10[%c2_158, %c0_159, %c0_160] : memref<8x8x1xf32, #tpu.memory_space<vmem>>, vector<1x8x1xf32>
    %302 = vector.shape_cast %301 : vector<1x8x1xf32> to vector<8x1xf32>
    %303 = vector.extract_strided_slice %288 {offsets = [2, 0], sizes = [1, 512], strides = [1, 1]} : vector<8x512xf32> to vector<1x512xf32>
    %304 = vector.broadcast %302 : vector<8x1xf32> to vector<8x512xf32>
    %305 = vector.broadcast %303 : vector<1x512xf32> to vector<8x512xf32>
    %306 = arith.mulf %304, %305 : vector<8x512xf32>
    %c3_161 = arith.constant 3 : index
    %c0_162 = arith.constant 0 : index
    %c0_163 = arith.constant 0 : index
    %307 = vector.load %arg10[%c3_161, %c0_162, %c0_163] : memref<8x8x1xf32, #tpu.memory_space<vmem>>, vector<1x8x1xf32>
    %308 = vector.shape_cast %307 : vector<1x8x1xf32> to vector<8x1xf32>
    %309 = vector.extract_strided_slice %288 {offsets = [3, 0], sizes = [1, 512], strides = [1, 1]} : vector<8x512xf32> to vector<1x512xf32>
    %310 = vector.broadcast %308 : vector<8x1xf32> to vector<8x512xf32>
    %311 = vector.broadcast %309 : vector<1x512xf32> to vector<8x512xf32>
    %312 = arith.mulf %310, %311 : vector<8x512xf32>
    %c4_164 = arith.constant 4 : index
    %c0_165 = arith.constant 0 : index
    %c0_166 = arith.constant 0 : index
    %313 = vector.load %arg10[%c4_164, %c0_165, %c0_166] : memref<8x8x1xf32, #tpu.memory_space<vmem>>, vector<1x8x1xf32>
    %314 = vector.shape_cast %313 : vector<1x8x1xf32> to vector<8x1xf32>
    %315 = vector.extract_strided_slice %288 {offsets = [4, 0], sizes = [1, 512], strides = [1, 1]} : vector<8x512xf32> to vector<1x512xf32>
    %316 = vector.broadcast %314 : vector<8x1xf32> to vector<8x512xf32>
    %317 = vector.broadcast %315 : vector<1x512xf32> to vector<8x512xf32>
    %318 = arith.mulf %316, %317 : vector<8x512xf32>
    %c5_167 = arith.constant 5 : index
    %c0_168 = arith.constant 0 : index
    %c0_169 = arith.constant 0 : index
    %319 = vector.load %arg10[%c5_167, %c0_168, %c0_169] : memref<8x8x1xf32, #tpu.memory_space<vmem>>, vector<1x8x1xf32>
    %320 = vector.shape_cast %319 : vector<1x8x1xf32> to vector<8x1xf32>
    %321 = vector.extract_strided_slice %288 {offsets = [5, 0], sizes = [1, 512], strides = [1, 1]} : vector<8x512xf32> to vector<1x512xf32>
    %322 = vector.broadcast %320 : vector<8x1xf32> to vector<8x512xf32>
    %323 = vector.broadcast %321 : vector<1x512xf32> to vector<8x512xf32>
    %324 = arith.mulf %322, %323 : vector<8x512xf32>
    %c6_170 = arith.constant 6 : index
    %c0_171 = arith.constant 0 : index
    %c0_172 = arith.constant 0 : index
    %325 = vector.load %arg10[%c6_170, %c0_171, %c0_172] : memref<8x8x1xf32, #tpu.memory_space<vmem>>, vector<1x8x1xf32>
    %326 = vector.shape_cast %325 : vector<1x8x1xf32> to vector<8x1xf32>
    %327 = vector.extract_strided_slice %288 {offsets = [6, 0], sizes = [1, 512], strides = [1, 1]} : vector<8x512xf32> to vector<1x512xf32>
    %328 = vector.broadcast %326 : vector<8x1xf32> to vector<8x512xf32>
    %329 = vector.broadcast %327 : vector<1x512xf32> to vector<8x512xf32>
    %330 = arith.mulf %328, %329 : vector<8x512xf32>
    %c7_173 = arith.constant 7 : index
    %c0_174 = arith.constant 0 : index
    %c0_175 = arith.constant 0 : index
    %331 = vector.load %arg10[%c7_173, %c0_174, %c0_175] : memref<8x8x1xf32, #tpu.memory_space<vmem>>, vector<1x8x1xf32>
    %332 = vector.shape_cast %331 : vector<1x8x1xf32> to vector<8x1xf32>
    %333 = vector.extract_strided_slice %288 {offsets = [7, 0], sizes = [1, 512], strides = [1, 1]} : vector<8x512xf32> to vector<1x512xf32>
    %334 = vector.broadcast %332 : vector<8x1xf32> to vector<8x512xf32>
    %335 = vector.broadcast %333 : vector<1x512xf32> to vector<8x512xf32>
    %336 = arith.mulf %334, %335 : vector<8x512xf32>
    %337 = arith.addf %294, %300 : vector<8x512xf32>
    %338 = arith.addf %306, %312 : vector<8x512xf32>
    %339 = arith.addf %318, %324 : vector<8x512xf32>
    %340 = arith.addf %330, %336 : vector<8x512xf32>
    %341 = arith.addf %337, %338 : vector<8x512xf32>
    %342 = arith.addf %339, %340 : vector<8x512xf32>
    %343 = arith.addf %341, %342 : vector<8x512xf32>
    %cst_176 = arith.constant dense<0.000000e+00> : vector<8xf32>
    %344 = vector.multi_reduction <add>, %343, %cst_176 [1] : vector<8x512xf32> to vector<8xf32>
    %345 = vector.shape_cast %344 : vector<8xf32> to vector<8x1xf32>
    %346 = arith.mulf %343, %343 : vector<8x512xf32>
    %cst_177 = arith.constant dense<0.000000e+00> : vector<8xf32>
    %347 = vector.multi_reduction <add>, %346, %cst_177 [1] : vector<8x512xf32> to vector<8xf32>
    %348 = vector.shape_cast %347 : vector<8xf32> to vector<8x1xf32>
    %cst_178 = arith.constant 0.001953125 : f32
    %349 = vector.broadcast %cst_178 : f32 to vector<8x1xf32>
    %350 = arith.mulf %345, %349 : vector<8x1xf32>
    %cst_179 = arith.constant 0.001953125 : f32
    %351 = vector.broadcast %cst_179 : f32 to vector<8x1xf32>
    %352 = arith.mulf %348, %351 : vector<8x1xf32>
    %353 = arith.mulf %350, %350 : vector<8x1xf32>
    %354 = arith.subf %352, %353 : vector<8x1xf32>
    %cst_180 = arith.constant 0.000000e+00 : f32
    %355 = vector.broadcast %cst_180 : f32 to vector<8x1xf32>
    %356 = arith.maximumf %354, %355 : vector<8x1xf32>
    %c0_181 = arith.constant 0 : index
    %c0_182 = arith.constant 0 : index
    %357 = vector.load %arg11[%c0_181, %c0_182] : memref<8x1xf32, #tpu.memory_space<vmem>>, vector<8x1xf32>
    %cst_183 = arith.constant 9.99999974E-6 : f32
    %358 = vector.broadcast %cst_183 : f32 to vector<8x1xf32>
    %359 = arith.addf %356, %358 : vector<8x1xf32>
    %360 = math.rsqrt %359 : vector<8x1xf32>
    %361 = arith.mulf %357, %360 : vector<8x1xf32>
    %c0_184 = arith.constant 0 : index
    %c0_185 = arith.constant 0 : index
    %362 = vector.load %arg12[%c0_184, %c0_185] : memref<8x1xf32, #tpu.memory_space<vmem>>, vector<8x1xf32>
    %363 = arith.mulf %350, %361 : vector<8x1xf32>
    %364 = arith.subf %362, %363 : vector<8x1xf32>
    %365 = vector.broadcast %361 : vector<8x1xf32> to vector<8x512xf32>
    %366 = arith.mulf %343, %365 : vector<8x512xf32>
    %367 = vector.broadcast %364 : vector<8x1xf32> to vector<8x512xf32>
    %368 = arith.addf %366, %367 : vector<8x512xf32>
    %369 = arith.addf %52, %368 : vector<8x512xf32>
    %c0_186 = arith.constant 0 : index
    %c0_187 = arith.constant 0 : index
    %370 = vector.load %arg13[%c0_186, %c0_187] : memref<8x512xf32, #tpu.memory_space<vmem>>, vector<8x512xf32>
    tpu.vector_store %arg13[%c0_186, %c0_187], %369 {strides = array<i32>} : memref<8x512xf32, #tpu.memory_space<vmem>>, vector<8x512xf32>,
    return
  }
}

</mosaic_0001>

<bundles_post_ra>
// kernel: squeeze.6
= control target key start
LH: loop header
LB: loop body
LE: loop exit
PB: predicated region body
PF: predicated region fallthrough
CT: control target
= control target key end

     0   :  { %vm17_vm0 = vcmask 64512   ;;  %s62_s0 = inlined_call_operand.vmem [shape: f32[8,3,3], index: 0, kind: input, shape index: {}]   ;;  %s63_s1 = inlined_call_operand.vmem [shape: f32[8,9], index: 1, kind: output, shape index: {}]  }
   0x1   :  { %v30_v0 = vld [vmem:[%s62_s0 + $0x8] sm:$0xf]  ;;  %v31_v1 = vld [vmem:[%s62_s0 + $0x4] sm:$0xf]  ;;  %v14_v2 = vld [vmem:[%s62_s0] sm:$0xf] }
   0x2   :  { %9 = vst [vmem:[#allocation0] sm:$0xf] %v30_v0  ;;  %13 = vst [vmem:[#allocation0 + $0x10] sm:$0xf] %v31_v1 }
   0x3   :  { %15 = vst [vmem:[#allocation0 + $0x8] sm:$0xf] %v14_v2 }
   0x9   :  { %v20_v4 = vld [vmem:[#allocation0 + $0x10] sm:$0x7]   ;;  %v25_v5 = vld [vmem:[#allocation0] sm:$0x7]  }
   0xa   :  { %v16_v3 = vld [vmem:[#allocation0 + $0x8] sm:$0x7]   ;;  %32 = vst.msk [vmem:[%s63_s1 + $0x3] sm:$0x7] %vm17_vm0, %v20_v4   ;;  %33 = vst.msk [vmem:[%s63_s1 + $0x6] sm:$0x7] %vm17_vm0, %v25_v5  }
   0xb   :  { %18 = vst.msk [vmem:[%s63_s1] sm:$0x7] %vm17_vm0, %v16_v3  }

// kernel: _xblock_forward.1
= control target key start
LH: loop header
LB: loop body
LE: loop exit
PB: predicated region body
PF: predicated region fallthrough
CT: control target
= control target key end

     0   :  { %v1677_v0 = vmov 0   ;;  %s1678_s28 = smov 16   ;;  %s1679_s29 = smov 17   ;;  %v54_v48 = vlaneseq  ;;  %v1686_v49 = vmov 839922192   ;;  %s3006_s5 = inlined_call_operand.vmem [shape: f32[9,4,1], index: 5, kind: input, shape index: {}]   ;;  %s3007_s0 = inlined_call_operand.vmem [shape: f32[4,512], index: 0, kind: input, shape index: {}]   ;;  %s3008_s6 = inlined_call_operand.vmem [shape: f32[4,8,1], index: 6, kind: input, shape index: {}]   ;;  %s3009_s1 = inlined_call_operand.vmem [shape: f32[9,1,512], index: 1, kind: input, shape index: {}]   ;;  %s3010_s9 = inlined_call_operand.vmem [shape: f32[9,8,1], index: 9, kind: input, shape index: {}]   ;;  %s3011_s7 = inlined_call_operand.vmem [shape: f32[8,1], index: 7, kind: input, shape index: {}]   ;;  %s3012_s8 = inlined_call_operand.vmem [shape: f32[8,1], index: 8, kind: input, shape index: {}]   ;;  %s3013_s10 = inlined_call_operand.vmem [shape: f32[8,8,1], index: 10, kind: input, shape index: {}]   ;;  %s3014_s2 = inlined_call_operand.vmem [shape: f32[4,8,1], index: 2, kind: input, shape index: {}]   ;;  %s3015_s3 = inlined_call_operand.vmem [shape: f32[8,1], index: 3, kind: input, shape index: {}]   ;;  %s3016_s4 = inlined_call_operand.vmem [shape: f32[8,1], index: 4, kind: input, shape index: {}]   ;;  %s3017_s11 = inlined_call_operand.vmem [shape: f32[8,1], index: 11, kind: input, shape index: {}]   ;;  %s3018_s12 = inlined_call_operand.vmem [shape: f32[8,1], index: 12, kind: input, shape index: {}]   ;;  %s3019_s13 = inlined_call_operand.vmem [shape: f32[8,512], index: 13, kind: output, shape index: {}]  }
   0x1   :  { %1656 = vset.pattern.permute.xlu1 %v1677_v0  ;;  %1655 = vset.pattern.permute.xlu0 %v1677_v0  ;;  %v1614_v1 = vld [vmem:[%s3006_s5 + $0x4] sm:$0xf]  ;;  %v1612_v2 = vld [vmem:[%s3006_s5 + $0x10] sm:$0xf]  ;;  %v1616_v3 = vld [vmem:[%s3006_s5 + $0x8] sm:$0xf]  ;;  %v308_v50 = vunpack.c.l.s4 %v1686_v49 }
   0x2   :  { %418 = vperm.xlu1 %1656, %v1614_v1   ;;  %305 = vperm.xlu0 %1655, %v1612_v2   ;;  %v364_v4 = vld [vmem:[%s3006_s5] sm:$0xf]  ;;  %v45_v6 = vld [vmem:[%s3007_s0 + $0x8] sm:$0xff]  ;;  %v1620_v9 = vld [vmem:[%s3006_s5 + $0x14] sm:$0xf]  ;;  %s1680_s30 = smov 15  }
   0x3   :  { %v44_v5 = vld [vmem:[%s3007_s0] sm:$0xff]  ;;  %v292_v8 = vmul.f32 0.5, %v45_v6  ;;  %v1618_v10 = vld [vmem:[%s3006_s5 + $0xc] sm:$0xf]  ;;  %v1624_v11 = vld [vmem:[%s3006_s5 + $0x1c] sm:$0xf]  ;;  %v309_v54 = vunpack.c.0.s8 %v308_v50 }
   0x4   :  { %v291_v7 = vmul.f32 0.5, %v44_v5  ;;  %v1622_v12 = vld [vmem:[%s3006_s5 + $0x18] sm:$0xf]  ;;  %s1681_s14 = smov 1   ;;  %s1682_s15 = smov 127   ;;  %v787_v24 = vld [vmem:[%s3008_s6] sm:$0xff] }
   0x5   :  { %s1683_s16 = smov 113   ;;  %s1684_s17 = smov 112   ;;  %v1626_v23 = vld [vmem:[%s3006_s5 + $0x20] sm:$0xf]  ;;  %v1627_v25 = vld [vmem:[%s3008_s6 + $0x8] sm:$0xff]  ;;  %v1628_v26 = vld [vmem:[%s3008_s6 + $0x10] sm:$0xff] }
   0x6   :  { %469 = vperm.xlu1 %1656, %v1616_v3   ;;  %367 = vperm.xlu0 %1655, %v364_v4   ;;  %1657 = vtanh.f32 %v291_v7  ;;  %s1685_s20 = smov 111   ;;  %v1629_v27 = vld [vmem:[%s3008_s6 + $0x18] sm:$0xff]  ;;  %v1902_v53 = vshrl.u32 %v54_v48, 7  ;;  %v1908_v57 = vand.u32 127, %v54_v48  ;;  %v338_v60 = vld [vmem:[%s3009_s1] sm:$0xf] }
   0x7   :  { %1659 = vtanh.f32 %v292_v8  ;;  %v1613_v61 = vld [vmem:[%s3009_s1 + $0x4] sm:$0xf]  ;;  %v1615_v63 = vld [vmem:[%s3009_s1 + $0x8] sm:$0xf]  ;;  %v1617_v4 = vld [vmem:[%s3009_s1 + $0xc] sm:$0xf] }
   0x8   :  { %3069 = vst [vmem:[#allocation4_spill] sm:$0xff] %v1902_v53  ;;  %v1911_v58 = vsub.s32 0, %v1902_v53  ;;  %v1914_v59 = vsub.s32 1, %v1902_v53  ;;  %v1923_v62 = vsub.s32 %v309_v54, %v1902_v53  ;;  %vm333_vm0 = vcmp.lt.s32.totalorder %v1908_v57, 17  ;;  %v1621_v8 = vld [vmem:[%s3009_s1 + $0x18] sm:$0xf] }
   0x9   :  { %vm382_vm1 = vcmp.lt.s32.totalorder %v1908_v57, 16  ;;  %vm433_vm2 = vcmp.lt.s32.totalorder %v1908_v57, 15  ;;  %vm484_vm3 = vcmp.lt.s32.totalorder %v1908_v57, 1  ;;  %vm535_vm4 = vcmp.lt.s32.totalorder %v1908_v57, 127  ;;  %v2021_v54 = vld [vmem:[%s3009_s1 + $0x20] sm:$0xf] }
   0xa   :  { %571 = vperm.xlu1 %1656, %v1620_v9   ;;  %520 = vperm.xlu0 %1655, %v1618_v10   ;;  %3070 = vst [vmem:[#allocation5_spill] sm:$0xff] %v1911_v58  ;;  %v1934_v2 = vrot.slane %v338_v60, %v1911_v58  ;;  %v1937_v3 = vrot.slane %v338_v60, %v1914_v59  ;;  %v1957_v9 = vsub.s32 2, %v1902_v53  ;;  %vm586_vm5 = vcmp.lt.s32.totalorder %v1908_v57, 113 }
   0xb   :  { %v1950_v7 = vrot.slane %v1613_v61, %v1911_v58  ;;  %v1960_v10 = vrot.slane %v1615_v63, %v1914_v59  ;;  %vm637_vm6 = vcmp.lt.s32.totalorder %v1908_v57, 112  ;;  %vm688_vm7 = vcmp.lt.s32.totalorder %v1908_v57, 111 }
   0xc   :  { %3071 = vst [vmem:[#allocation6_spill] sm:$0xff] %v1934_v2  ;;  %3072 = vst [vmem:[#allocation7_spill] sm:$0xff] %v1937_v3  ;;  %v2010_v48 = vrot.slane %v1613_v61, %v1957_v9  ;;  %v2016_v50 = vrot.slane %v1615_v63, %v1957_v9 }
   0xd   :  { %3074 = vst [vmem:[#allocation9_spill] sm:$0xff] %v1950_v7  ;;  %3075 = vst [vmem:[#allocation10_spill] sm:$0xff] %v1957_v9 }
   0xe   :  { %673 = vperm.xlu1 %1656, %v1624_v11   ;;  %622 = vperm.xlu0 %1655, %v1622_v12   ;;  %v1963_v11 = vrot.slane %v1615_v63, %v1911_v58  ;;  %v1623_v12 = vld [vmem:[%s3009_s1 + $0x1c] sm:$0xf]  ;;  %3083 = vst [vmem:[#allocation18_spill] sm:$0xff] %v2010_v48  ;;  %3085 = vst [vmem:[#allocation20_spill] sm:$0xff] %v2016_v50 }
  0x10   :  { %3076 = vst [vmem:[#allocation11_spill] sm:$0xff] %v1963_v11 }
  0x13   :  { %v1658_v13 = vpop.eup %1657 }
  0x14   :  { %v1660_v14 = vpop.eup %1659  ;;  %v295_v15 = vmul.f32 0.5, %v1658_v13  ;;  %v1970_v13 = vsub.s32 3, %v1902_v53 }
  0x15   :  { %v296_v16 = vmul.f32 0.5, %v1660_v14  ;;  %v1973_v14 = vrot.slane %v1617_v4, %v1914_v59 }
  0x16   :  { %v297_v17 = vadd.f32 0.5, %v295_v15  ;;  %3077 = vst [vmem:[#allocation12_spill] sm:$0xff] %v1970_v13  ;;  %v1976_v15 = vrot.slane %v1617_v4, %v1911_v58  ;;  %v2013_v49 = vrot.slane %v1613_v61, %v1970_v13 }
  0x17   :  { %v298_v18 = vadd.f32 0.5, %v296_v16 }
  0x18   :  { %v1787_v19 = vmul.f32 %v297_v17, %v44_v5  ;;  %v1619_v5 = vld [vmem:[%s3009_s1 + $0x14] sm:$0xf]  ;;  %3084 = vst [vmem:[#allocation19_spill] sm:$0xff] %v2013_v49 }
  0x19   :  { %v1789_v20 = vmul.f32 %v298_v18, %v45_v6  ;;  %v1947_v6 = vrot.slane %v1613_v61, %v1914_v59  ;;  %v1980_v16 = vrot.slane %v1619_v5, %v1911_v58  ;;  %v2033_v61 = vrot.slane %v1617_v4, %v1957_v9 }
  0x1a   :  { %3067 = vst [vmem:[#allocation2_spill] sm:$0xff] %v1787_v19  ;;  %374 = vrot.lane.b32.xlu1 %v1787_v19, %s1678_s28  ;;  %323 = vrot.lane.b32.xlu0 %v1787_v19, %s1679_s29  ;;  %v319_v21 = vcombine.high %v1787_v19, %v1787_v19  ;;  %v2043_v50 = vrot.slane %v1619_v5, %v1957_v9 }
  0x1b   :  { %3068 = vst [vmem:[#allocation3_spill] sm:$0xff] %v1789_v20  ;;  %v320_v22 = vcombine.high %v1789_v20, %v1789_v20  ;;  %3073 = vst [vmem:[#allocation8_spill] sm:$0xff] %v1947_v6  ;;  %v2046_v49 = vrot.slane %v1619_v5, %v1970_v13 }
  0x1c   :  { %3087 = vst [vmem:[#allocation22_spill] sm:$0xff] %v2033_v61  ;;  %3089 = vst [vmem:[#allocation24_spill] sm:$0xff] %v2043_v50  ;;  %v2062_v61 = vrot.slane %v2021_v54, %v1911_v58 }
  0x1d   :  { %3090 = vst [vmem:[#allocation25_spill] sm:$0xff] %v2046_v49 }
  0x1e   :  { %329 = vrot.lane.b32.xlu0 %v320_v22, %s1679_s29  ;;  %325 = vrot.lane.b32.xlu1 %v319_v21, %s1679_s29  ;;  %3095 = vst [vmem:[#allocation30_spill] sm:$0xff] %v2062_v61 }
  0x22   :  { %376 = vrot.lane.b32.xlu0 %v319_v21, %s1678_s28  ;;  %380 = vrot.lane.b32.xlu1 %v320_v22, %s1678_s28 }
  0x26   :  { %425 = vrot.lane.b32.xlu0 %v1787_v19, %s1680_s30  ;;  %427 = vrot.lane.b32.xlu1 %v319_v21, %s1680_s30 }
  0x2a   :  { %431 = vrot.lane.b32.xlu0 %v320_v22, %s1680_s30  ;;  %476 = vrot.lane.b32.xlu1 %v1787_v19, %s1681_s14 }
  0x2e   :  { %478 = vrot.lane.b32.xlu0 %v319_v21, %s1681_s14  ;;  %482 = vrot.lane.b32.xlu1 %v320_v22, %s1681_s14 }
  0x32   :  { %527 = vrot.lane.b32.xlu0 %v1787_v19, %s1682_s15  ;;  %529 = vrot.lane.b32.xlu1 %v319_v21, %s1682_s15 }
  0x36   :  { %531 = vrot.lane.b32.xlu0 %v1789_v20, %s1682_s15  ;;  %578 = vrot.lane.b32.xlu1 %v1787_v19, %s1683_s16 }
  0x3a   :  { %580 = vrot.lane.b32.xlu0 %v319_v21, %s1683_s16  ;;  %582 = vrot.lane.b32.xlu1 %v1789_v20, %s1683_s16 }
  0x3e   :  { %629 = vrot.lane.b32.xlu0 %v1787_v19, %s1684_s17  ;;  %631 = vrot.lane.b32.xlu1 %v319_v21, %s1684_s17 }
  0x42   :  { %633 = vrot.lane.b32.xlu0 %v1789_v20, %s1684_s17  ;;  %327 = vrot.lane.b32.xlu1 %v1789_v20, %s1679_s29 }
  0x46   :  { %378 = vrot.lane.b32.xlu0 %v1789_v20, %s1678_s28  ;;  %429 = vrot.lane.b32.xlu1 %v1789_v20, %s1680_s30 }
  0x4a   :  { %480 = vrot.lane.b32.xlu0 %v1789_v20, %s1681_s14  ;;  %533 = vrot.lane.b32.xlu1 %v320_v22, %s1682_s15 }
  0x4e   :  { %584 = vrot.lane.b32.xlu0 %v320_v22, %s1683_s16  ;;  %635 = vrot.lane.b32.xlu1 %v320_v22, %s1684_s17 }
  0x52   :  { %724 = vperm.xlu0 %1655, %v1626_v23   ;;  %680 = vrot.lane.b32.xlu1 %v1787_v19, %s1685_s20  ;;  %v1994_v23 = vrot.slane %v1621_v8, %v1914_v59  ;;  %v2030_v19 = vrot.slane %v1615_v63, %v1970_v13  ;;  %v2049_v63 = vrot.slane %v1621_v8, %v1957_v9 }
  0x54   :  { %3079 = vst [vmem:[#allocation14_spill] sm:$0xff] %v1994_v23  ;;  %3086 = vst [vmem:[#allocation21_spill] sm:$0xff] %v2030_v19  ;;  %v2052_v19 = vrot.slane %v1621_v8, %v1970_v13 }
  0x55   :  { %3091 = vst [vmem:[#allocation26_spill] sm:$0xff] %v2049_v63 }
  0x56   :  { %682 = vrot.lane.b32.xlu0 %v319_v21, %s1685_s20  ;;  %684 = vrot.lane.b32.xlu1 %v1789_v20, %s1685_s20  ;;  %v1987_v21 = vrot.slane %v1619_v5, %v1914_v59  ;;  %3092 = vst [vmem:[#allocation27_spill] sm:$0xff] %v2052_v19 }
  0x58   :  { %3078 = vst [vmem:[#allocation13_spill] sm:$0xff] %v1987_v21 }
  0x5a   :  { %686 = vrot.lane.b32.xlu0 %v320_v22, %s1685_s20  ;;  %790 = vperm.xlu1 %1656, %v787_v24   ;;  %v1991_v22 = vrot.slane %v1621_v8, %v1911_v58  ;;  %v1998_v24 = vrot.slane %v1623_v12, %v1911_v58 }
  0x5e   :  { %839 = vperm.xlu0 %1655, %v1627_v25   ;;  %886 = vperm.xlu1 %1656, %v1628_v26   ;;  %v2001_v25 = vrot.slane %v1623_v12, %v1914_v59  ;;  %v2004_v26 = vrot.slane %v338_v60, %v1957_v9 }
  0x60   :  { %3080 = vst [vmem:[#allocation15_spill] sm:$0xff] %v2001_v25  ;;  %3081 = vst [vmem:[#allocation16_spill] sm:$0xff] %v2004_v26 }
  0x62   :  { %933 = vperm.xlu0 %1655, %v1629_v27   ;;  %v2007_v27 = vrot.slane %v338_v60, %v1970_v13 }
  0x64   :  { %3082 = vst [vmem:[#allocation17_spill] sm:$0xff] %v2007_v27  ;;  %v2036_v27 = vrot.slane %v1617_v4, %v1970_v13  ;;  %v2055_v4 = vrot.slane %v1623_v12, %v1957_v9 }
  0x66   :  { %3088 = vst [vmem:[#allocation23_spill] sm:$0xff] %v2036_v27  ;;  %3093 = vst [vmem:[#allocation28_spill] sm:$0xff] %v2055_v4  ;;  %v2058_v27 = vrot.slane %v1623_v12, %v1970_v13 }
  0x68   :  { %3094 = vst [vmem:[#allocation29_spill] sm:$0xff] %v2058_v27 }
  0x7d   :  { %v1858_v28 = vpop.permute.xlu1 %418  ;;  %v1860_v29 = vpop.permute.xlu0 %305 }
  0x81   :  { %v1862_v30 = vpop.permute.xlu1 %469  ;;  %v1864_v31 = vpop.permute.xlu0 %367 }
  0x85   :  { %v1866_v32 = vpop.permute.xlu1 %571  ;;  %v1868_v33 = vpop.permute.xlu0 %520 }
  0x89   :  { %v1870_v34 = vpop.permute.xlu1 %673  ;;  %v1872_v35 = vpop.permute.xlu0 %622 }
  0x8d   :  { %v1874_v36 = vpop.permute.xlu1 %374  ;;  %v1876_v37 = vpop.permute.xlu0 %323 }
  0x91   :  { %v1878_v38 = vpop.permute.xlu0 %329  ;;  %v1880_v39 = vpop.permute.xlu1 %325 }
  0x92   :  { %v337_v5 = vsel %vm333_vm0, %v1878_v38, %v1876_v37  ;;  %v336_v8 = vsel %vm333_vm0, %v1876_v37, %v1880_v39 }
  0x95   :  { %v1882_v40 = vpop.permute.xlu0 %376  ;;  %v1884_v41 = vpop.permute.xlu1 %380 }
  0x96   :  { %v386_v26 = vsel %vm382_vm1, %v1884_v41, %v1874_v36  ;;  %v385_v12 = vsel %vm382_vm1, %v1874_v36, %v1882_v40 }
  0x97   :  { %v410_v58 = vmul.f32 %v1950_v7, %v386_v26  ;;  %v361_v7 = vmul.f32 %v1937_v3, %v336_v8  ;;  %v411_v50 = vmul.f32 %v1947_v6, %v385_v12  ;;  %v2123_v3 = vrot.slane %v1860_v29, %v1923_v62 }
  0x99   :  { %v1886_v42 = vpop.permute.xlu0 %425  ;;  %v1888_v43 = vpop.permute.xlu1 %427 }
  0x9a   :  { %v436_v61 = vsel %vm433_vm2, %v1886_v42, %v1888_v43 }
  0x9b   :  { %v462_v48 = vmul.f32 %v1960_v10, %v436_v61  ;;  %v2129_v61 = vrot.slane %v2021_v54, %v1914_v59 }
  0x9d   :  { %v1890_v44 = vpop.permute.xlu0 %431  ;;  %v1892_v45 = vpop.permute.xlu1 %476  ;;  %3096 = vst [vmem:[#allocation31_spill] sm:$0xff] %v2129_v61 }
  0x9e   :  { %v437_v60 = vsel %vm433_vm2, %v1890_v44, %v1886_v42 }
  0x9f   :  { %v461_v13 = vmul.f32 %v1963_v11, %v437_v60  ;;  %v360_v11 = vmul.f32 %v1934_v2, %v337_v5 }
  0xa1   :  { %v1894_v46 = vpop.permute.xlu0 %478  ;;  %v1896_v47 = vpop.permute.xlu1 %482  ;;  %v472_v27 = vmul.f32 %v1862_v30, %v461_v13  ;;  %v421_v13 = vmul.f32 %v1858_v28, %v410_v58  ;;  %v2145_v58 = vmul.f32 %v1862_v30, %v462_v48 }
  0xa2   :  { %v487_v9 = vsel %vm484_vm3, %v1892_v45, %v1894_v46  ;;  %v488_v37 = vsel %vm484_vm3, %v1896_v47, %v1892_v45 }
  0xa3   :  { %v513_v4 = vmul.f32 %v1973_v14, %v487_v9  ;;  %v512_v19 = vmul.f32 %v1976_v15, %v488_v37  ;;  %v2132_v37 = vmul.f32 %v1864_v31, %v360_v11  ;;  %v2147_v62 = vadd.f32 %v472_v27, %v421_v13  ;;  %v3100_v13 = vld [vmem:[#allocation18_spill] sm:$0xff] }
  0xa5   :  { %v1898_v51 = vpop.permute.xlu0 %527  ;;  %v1900_v52 = vpop.permute.xlu1 %529  ;;  %v2151_v11 = vmul.f32 %v1868_v33, %v512_v19 }
  0xa6   :  { %v538_v26 = vsel %vm535_vm4, %v1898_v51, %v1900_v52 }
  0xa9   :  { %v1904_v55 = vpop.permute.xlu0 %531  ;;  %v1906_v56 = vpop.permute.xlu1 %578 }
  0xaa   :  { %v537_v42 = vsel %vm535_vm4, %v1900_v52, %v1904_v55 }
  0xab   :  { %v564_v5 = vmul.f32 %v1987_v21, %v537_v42  ;;  %v2138_v42 = vmul.f32 %v1858_v28, %v411_v50 }
  0xad   :  { %v1928_v0 = vpop.permute.xlu0 %580  ;;  %v1930_v1 = vpop.permute.xlu1 %582  ;;  %v575_v50 = vmul.f32 %v1866_v32, %v564_v5 }
  0xae   :  { %v589_v60 = vsel %vm586_vm5, %v1906_v56, %v1928_v0  ;;  %v588_v45 = vsel %vm586_vm5, %v1928_v0, %v1930_v1  ;;  %v563_v0 = vmul.f32 %v1980_v16, %v538_v26  ;;  %v2135_v26 = vmul.f32 %v1864_v31, %v361_v7 }
  0xaf   :  { %v614_v8 = vmul.f32 %v1991_v22, %v589_v60  ;;  %v615_v12 = vmul.f32 %v1994_v23, %v588_v45  ;;  %v524_v60 = vmul.f32 %v1868_v33, %v513_v4  ;;  %v3103_v23 = vld [vmem:[#allocation21_spill] sm:$0xff] }
  0xb0   :  { %v2154_v7 = vmul.f32 %v1866_v32, %v563_v0 }
  0xb1   :  { %v1982_v17 = vpop.permute.xlu0 %629  ;;  %v1984_v18 = vpop.permute.xlu1 %631  ;;  %v625_v45 = vmul.f32 %v1872_v35, %v614_v8 }
  0xb2   :  { %v640_v29 = vsel %vm637_vm6, %v1982_v17, %v1984_v18 }
  0xb3   :  { %v665_v48 = vmul.f32 %v1998_v24, %v640_v29  ;;  %v3101_v29 = vld [vmem:[#allocation19_spill] sm:$0xff] }
  0xb5   :  { %v2027_v53 = vpop.permute.xlu0 %633  ;;  %v328_v20 = vpop.permute.xlu1 %327 }
  0xb6   :  { %v639_v52 = vsel %vm637_vm6, %v1984_v18, %v2027_v53  ;;  %v334_v19 = vsel %vm333_vm0, %v328_v20, %v1878_v38  ;;  %v335_v4 = vsel %vm333_vm0, %v1880_v39, %v328_v20 }
  0xb7   :  { %v666_v9 = vmul.f32 %v2001_v25, %v639_v52  ;;  %v626_v52 = vmul.f32 %v1872_v35, %v615_v12  ;;  %v3099_v12 = vld [vmem:[#allocation29_spill] sm:$0xff]  ;;  %v3104_v25 = vld [vmem:[#allocation22_spill] sm:$0xff] }
  0xb9   :  { %v379_v36 = vpop.permute.xlu0 %378  ;;  %v430_v49 = vpop.permute.xlu1 %429  ;;  %v677_v27 = vmul.f32 %v1870_v34, %v666_v9 }
  0xba   :  { %v383_v0 = vsel %vm382_vm1, %v379_v36, %v1884_v41  ;;  %v384_v20 = vsel %vm382_vm1, %v1882_v40, %v379_v36  ;;  %v434_v39 = vsel %vm433_vm2, %v430_v49, %v1890_v44  ;;  %v435_v41 = vsel %vm433_vm2, %v1888_v43, %v430_v49  ;;  %v3097_v49 = vld [vmem:[#allocation27_spill] sm:$0xff] }
  0xbb   :  { %v412_v9 = vmul.f32 %v3100_v13, %v384_v20  ;;  %v3108_v20 = vld [vmem:[#allocation16_spill] sm:$0xff] }
  0xbd   :  { %v481_v6 = vpop.permute.xlu0 %480  ;;  %v534_v2 = vpop.permute.xlu1 %533 }
  0xbe   :  { %v486_v40 = vsel %vm484_vm3, %v1894_v46, %v481_v6  ;;  %v536_v44 = vsel %vm535_vm4, %v1904_v55, %v534_v2  ;;  %v539_v43 = vsel %vm535_vm4, %v534_v2, %v1898_v51  ;;  %v413_v46 = vmul.f32 %v3101_v29, %v383_v0  ;;  %v3105_v2 = vld [vmem:[#allocation23_spill] sm:$0xff]  ;;  %v3109_v0 = vld [vmem:[#allocation17_spill] sm:$0xff] }
  0xbf   :  { %v464_v55 = vmul.f32 %v3103_v23, %v434_v39  ;;  %v514_v51 = vmul.f32 %v3104_v25, %v486_v40  ;;  %v363_v13 = vmul.f32 %v3109_v0, %v334_v19 }
  0xc1   :  { %v585_v18 = vpop.permute.xlu0 %584  ;;  %v636_v21 = vpop.permute.xlu1 %635 }
  0xc2   :  { %v587_v5 = vsel %vm586_vm5, %v1930_v1, %v585_v18  ;;  %v590_v8 = vsel %vm586_vm5, %v585_v18, %v1906_v56  ;;  %v638_v38 = vsel %vm637_vm6, %v2027_v53, %v636_v21  ;;  %v641_v56 = vsel %vm637_vm6, %v636_v21, %v1982_v17  ;;  %v3098_v21 = vld [vmem:[#allocation28_spill] sm:$0xff] }
  0xc3   :  { %v485_v53 = vsel %vm484_vm3, %v481_v6, %v1896_v47  ;;  %v616_v1 = vmul.f32 %v2049_v63, %v587_v5  ;;  %v617_v17 = vmul.f32 %v3097_v49, %v590_v8  ;;  %v667_v36 = vmul.f32 %v3098_v21, %v638_v38  ;;  %v3102_v6 = vld [vmem:[#allocation20_spill] sm:$0xff]  ;;  %v3107_v49 = vld [vmem:[#allocation25_spill] sm:$0xff] }
  0xc4   :  { %v668_v47 = vmul.f32 %v3099_v12, %v641_v56  ;;  %v463_v18 = vmul.f32 %v3102_v6, %v435_v41  ;;  %v515_v5 = vmul.f32 %v3105_v2, %v485_v53  ;;  %v3106_v63 = vld [vmem:[#allocation24_spill] sm:$0xff]  ;;  %v566_v38 = vmul.f32 %v3107_v49, %v539_v43 }
  0xc5   :  { %v565_v8 = vmul.f32 %v3106_v63, %v536_v44  ;;  %v676_v56 = vmul.f32 %v1870_v34, %v665_v48  ;;  %v750_v12 = vadd.f32 %v677_v27, %v626_v52  ;;  %v362_v21 = vmul.f32 %v3108_v20, %v335_v4  ;;  %v681_v48 = vpop.permute.xlu1 %680 }
  0xc6   :  { %v627_v41 = vmul.f32 %v1872_v35, %v616_v1  ;;  %v628_v39 = vmul.f32 %v1872_v35, %v617_v17  ;;  %v678_v6 = vmul.f32 %v1870_v34, %v667_v36  ;;  %v679_v40 = vmul.f32 %v1870_v34, %v668_v47 }
  0xc7   :  { %v423_v53 = vmul.f32 %v1858_v28, %v412_v9  ;;  %v424_v44 = vmul.f32 %v1858_v28, %v413_v46  ;;  %v474_v43 = vmul.f32 %v1862_v30, %v463_v18  ;;  %v475_v52 = vmul.f32 %v1862_v30, %v464_v55  ;;  %v3110_v46 = vld [vmem:[#allocation10_spill] sm:$0xff]  ;;  %v3112_v18 = vld [vmem:[#allocation12_spill] sm:$0xff] }
  0xc8   :  { %v525_v27 = vmul.f32 %v1868_v33, %v514_v51  ;;  %v526_v19 = vmul.f32 %v1868_v33, %v515_v5  ;;  %v576_v4 = vmul.f32 %v1866_v32, %v565_v8  ;;  %v577_v35 = vmul.f32 %v1866_v32, %v566_v38  ;;  %v3114_v55 = vld [vmem:[#allocation2_spill] sm:$0xff] }
  0xc9   :  { %v746_v1 = vadd.f32 %v575_v50, %v524_v60  ;;  %v749_v17 = vadd.f32 %v676_v56, %v625_v45  ;;  %v372_v34 = vmul.f32 %v1864_v31, %v362_v21  ;;  %v373_v36 = vmul.f32 %v1864_v31, %v363_v13  ;;  %v685_v38 = vpop.permute.xlu1 %684 }
  0xca   :  { %v751_v47 = vadd.f32 %v678_v6, %v627_v41  ;;  %v752_v9 = vadd.f32 %v679_v40, %v628_v39  ;;  %v2235_v30 = vrot.slane %v2021_v54, %v3110_v46  ;;  %v2239_v33 = vrot.slane %v2021_v54, %v3112_v18  ;;  %v3116_v40 = vld [vmem:[#allocation3_spill] sm:$0xff] }
  0xcb   :  { %v735_v32 = vcombine.low %v2132_v37, %v2135_v26  ;;  %v742_v60 = vadd.f32 %v2145_v58, %v2138_v42  ;;  %v745_v31 = vadd.f32 %v2154_v7, %v2151_v11  ;;  %v764_v50 = vadd.f32 %v750_v12, %v746_v1  ;;  %v3115_v12 = vld [vmem:[#allocation30_spill] sm:$0xff] }
  0xcc   :  { %3111 = vst [vmem:[#allocation19_spill] sm:$0xff] %v2235_v30  ;;  %3113 = vst [vmem:[#allocation21_spill] sm:$0xff] %v2239_v33  ;;  %v743_v45 = vadd.f32 %v474_v43, %v423_v53  ;;  %v744_v21 = vadd.f32 %v475_v52, %v424_v44  ;;  %v747_v13 = vadd.f32 %v576_v4, %v525_v27 }
  0xcd   :  { %v725_v28 = vpop.permute.xlu0 %724  ;;  %v748_v6 = vadd.f32 %v577_v35, %v526_v19  ;;  %v315_v51 = vmul.f32 %v2123_v3, %v3114_v55  ;;  %v757_v54 = vcombine.low %v2147_v62, %v742_v60  ;;  %v763_v5 = vadd.f32 %v749_v17, %v745_v31  ;;  %v3117_v19 = vld [vmem:[#allocation4_spill] sm:$0xff]  ;;  %v3119_v55 = vld [vmem:[#allocation5_spill] sm:$0xff] }
  0xce   :  { %v736_v8 = vcombine.low %v372_v34, %v373_v36  ;;  %v765_v26 = vadd.f32 %v751_v47, %v747_v13  ;;  %v316_v62 = vmul.f32 %v2123_v3, %v3116_v40  ;;  %v758_v53 = vcombine.low %v743_v45, %v744_v21 }
  0xcf   :  { %v766_v56 = vadd.f32 %v752_v9, %v748_v6  ;;  %v739_v11 = vadd.f32 %v735_v32, %v315_v51  ;;  %v771_v7 = vcombine.low %v763_v5, %v764_v50  ;;  %v2259_v4 = vsub.s32 4, %v3117_v19 }
  0xd0   :  { %v740_v35 = vadd.f32 %v736_v8, %v316_v62  ;;  %v2268_v60 = vsub.s32 5, %v3117_v19  ;;  %v2271_v13 = vsub.s32 6, %v3117_v19 }
  0xd1   :  { %v683_v37 = vpop.permute.xlu0 %682  ;;  %v761_v44 = vadd.f32 %v757_v54, %v739_v11  ;;  %v772_v1 = vcombine.low %v765_v26, %v766_v56  ;;  %v2281_v26 = vsub.s32 7, %v3117_v19 }
  0xd2   :  { %v690_v42 = vsel %vm688_vm7, %v683_v37, %v685_v38  ;;  %v691_v58 = vsel %vm688_vm7, %v681_v48, %v683_v37  ;;  %v762_v32 = vadd.f32 %v758_v53, %v740_v35  ;;  %3118 = vst [vmem:[#allocation22_spill] sm:$0xff] %v2268_v60 }
  0xd3   :  { %v716_v41 = vmul.f32 %v3115_v12, %v691_v58  ;;  %v717_v39 = vmul.f32 %v2129_v61, %v690_v42  ;;  %v775_v36 = vadd.f32 %v771_v7, %v761_v44 }
  0xd4   :  { %v776_v21 = vadd.f32 %v772_v1, %v762_v32 }
  0xd5   :  { %v727_v43 = vmul.f32 %v725_v28, %v716_v41  ;;  %v728_v52 = vmul.f32 %v725_v28, %v717_v39  ;;  %v687_v27 = vpop.permute.xlu0 %686  ;;  %v791_v11 = vpop.permute.xlu1 %790 }
  0xd6   :  { %v689_v17 = vsel %vm688_vm7, %v685_v38, %v687_v27  ;;  %v692_v34 = vsel %vm688_vm7, %v687_v27, %v681_v48 }
  0xd7   :  { %v781_v47 = vcombine.low %v727_v43, %v728_v52  ;;  %v718_v3 = vmul.f32 %v2235_v30, %v689_v17  ;;  %v719_v9 = vmul.f32 %v2239_v33, %v692_v34 }
  0xd9   :  { %v785_v31 = vadd.f32 %v781_v47, %v775_v36  ;;  %v729_v50 = vmul.f32 %v725_v28, %v718_v3  ;;  %v730_v45 = vmul.f32 %v725_v28, %v719_v9  ;;  %v840_v41 = vpop.permute.xlu0 %839 }
  0xdb   :  { %v782_v6 = vcombine.low %v729_v50, %v730_v45  ;;  %v798_v48 = vrot.slane %v785_v31, %v3119_v55  ;;  %v802_v51 = vrot.slane %v785_v31, %v2259_v4  ;;  %v845_v54 = vrot.slane %v785_v31, %v1914_v59 }
  0xdc   :  { %v849_v5 = vrot.slane %v785_v31, %v2268_v60  ;;  %v892_v8 = vrot.slane %v785_v31, %v3110_v46  ;;  %v896_v28 = vrot.slane %v785_v31, %v2271_v13  ;;  %v939_v56 = vrot.slane %v785_v31, %v3112_v18 }
  0xdd   :  { %v786_v38 = vadd.f32 %v782_v6, %v776_v21  ;;  %v818_v37 = vrot.slane %v798_v48, %v3119_v55  ;;  %v822_v7 = vrot.slane %v802_v51, %v3119_v55  ;;  %v865_v39 = vrot.slane %v845_v54, %v1914_v59  ;;  %v887_v51 = vpop.permute.xlu1 %886  ;;  %v934_v54 = vpop.permute.xlu0 %933 }
  0xde   :  { %v869_v53 = vrot.slane %v849_v5, %v1914_v59  ;;  %v912_v44 = vrot.slane %v892_v8, %v3110_v46  ;;  %v916_v17 = vrot.slane %v896_v28, %v3110_v46  ;;  %v943_v34 = vrot.slane %v785_v31, %v2281_v26 }
  0xdf   :  { %v806_v42 = vrot.slane %v786_v38, %v3119_v55  ;;  %v810_v58 = vrot.slane %v786_v38, %v2259_v4  ;;  %v853_v40 = vrot.slane %v786_v38, %v1914_v59  ;;  %v857_v62 = vrot.slane %v786_v38, %v2268_v60 }
  0xe0   :  { %v900_v27 = vrot.slane %v786_v38, %v3110_v46  ;;  %v904_v19 = vrot.slane %v786_v38, %v2271_v13  ;;  %v831_v36 = vmul.f32 %v818_v37, %v791_v11  ;;  %v832_v47 = vmul.f32 %v822_v7, %v791_v11 }
  0xe1   :  { %v826_v43 = vrot.slane %v806_v42, %v3119_v55  ;;  %v830_v52 = vrot.slane %v810_v58, %v3119_v55  ;;  %v873_v35 = vrot.slane %v853_v40, %v1914_v59  ;;  %v877_v1 = vrot.slane %v857_v62, %v1914_v59 }
  0xe2   :  { %v920_v3 = vrot.slane %v900_v27, %v3110_v46  ;;  %v924_v9 = vrot.slane %v904_v19, %v3110_v46  ;;  %v878_v45 = vmul.f32 %v865_v39, %v840_v41  ;;  %v879_v21 = vmul.f32 %v869_v53, %v840_v41 }
  0xe3   :  { %v833_v32 = vmul.f32 %v826_v43, %v791_v11  ;;  %v834_v50 = vmul.f32 %v830_v52, %v791_v11  ;;  %v880_v6 = vmul.f32 %v873_v35, %v840_v41  ;;  %v881_v48 = vmul.f32 %v877_v1, %v840_v41 }
  0xe4   :  { %v947_v5 = vrot.slane %v786_v38, %v3112_v18  ;;  %v951_v8 = vrot.slane %v786_v38, %v2281_v26  ;;  %v925_v28 = vmul.f32 %v912_v44, %v887_v51  ;;  %v926_v31 = vmul.f32 %v916_v17, %v887_v51 }
  0xe5   :  { %v959_v37 = vrot.slane %v939_v56, %v3112_v18  ;;  %v963_v42 = vrot.slane %v943_v34, %v3112_v18  ;;  %v927_v58 = vmul.f32 %v920_v3, %v887_v51  ;;  %v928_v7 = vmul.f32 %v924_v9, %v887_v51 }
  0xe6   :  { %v967_v11 = vrot.slane %v947_v5, %v3112_v18  ;;  %v971_v39 = vrot.slane %v951_v8, %v3112_v18  ;;  %v976_v40 = vadd.f32 %v878_v45, %v831_v36  ;;  %v977_v41 = vadd.f32 %v879_v21, %v832_v47  ;;  %v1631_v5 = vld [vmem:[%s3010_s9 + $0x8] sm:$0xff] }
  0xe7   :  { %v972_v62 = vmul.f32 %v959_v37, %v934_v54  ;;  %v973_v53 = vmul.f32 %v963_v42, %v934_v54  ;;  %v978_v43 = vadd.f32 %v880_v6, %v833_v32  ;;  %v979_v38 = vadd.f32 %v881_v48, %v834_v50 }
  0xe8   :  { %v974_v52 = vmul.f32 %v967_v11, %v934_v54  ;;  %v975_v27 = vmul.f32 %v971_v39, %v934_v54  ;;  %v1630_v54 = vld [vmem:[%s3010_s9 + $0x20] sm:$0xff] }
  0xe9   :  { %v980_v44 = vadd.f32 %v972_v62, %v925_v28  ;;  %v981_v19 = vadd.f32 %v973_v53, %v926_v31  ;;  %v1007_v39 = vld [vmem:[%s3011_s7] sm:$0xff] }
  0xea   :  { %v982_v35 = vadd.f32 %v974_v52, %v927_v58  ;;  %v983_v56 = vadd.f32 %v975_v27, %v928_v7  ;;  %v1011_v62 = vld [vmem:[%s3012_s8] sm:$0xff]  ;;  %v1632_v27 = vld [vmem:[%s3010_s9 + $0x10] sm:$0xff] }
  0xeb   :  { %v2308_v1 = vadd.f32 %v980_v44, %v976_v40  ;;  %v2310_v17 = vadd.f32 %v981_v19, %v977_v41  ;;  %v1634_v44 = vld [vmem:[%s3010_s9 + $0x28] sm:$0xff]  ;;  %v1635_v19 = vld [vmem:[%s3010_s9 + $0x30] sm:$0xff] }
  0xec   :  { %v2312_v34 = vadd.f32 %v982_v35, %v978_v43  ;;  %v2314_v3 = vadd.f32 %v983_v56, %v979_v38  ;;  %v1079_v43 = vld [vmem:[%s3010_s9] sm:$0xff]  ;;  %v1633_v38 = vld [vmem:[%s3010_s9 + $0x18] sm:$0xff] }
  0xed   :  { %v988_v36 = vadd.f32 %v2310_v17, %v2308_v1  ;;  %v993_v47 = vmul.f32 %v2308_v1, %v2308_v1  ;;  %v994_v9 = vmul.f32 %v2310_v17, %v2310_v17  ;;  %v1636_v35 = vld [vmem:[%s3010_s9 + $0x38] sm:$0xff]  ;;  %v1637_v56 = vld [vmem:[%s3010_s9 + $0x40] sm:$0xff] }
  0xee   :  { %v995_v32 = vmul.f32 %v2312_v34, %v2312_v34  ;;  %v996_v6 = vmul.f32 %v2314_v3, %v2314_v3 }
  0xef   :  { %v989_v50 = vadd.f32 %v988_v36, %v2312_v34  ;;  %v997_v45 = vadd.f32 %v994_v9, %v993_v47  ;;  %v1310_v36 = vld [vmem:[%s3013_s10] sm:$0xff]  ;;  %v1638_v47 = vld [vmem:[%s3013_s10 + $0x8] sm:$0xff]  ;;  %v1639_v9 = vld [vmem:[%s3013_s10 + $0x10] sm:$0xff] }
  0xf1   :  { %v990_v21 = vadd.f32 %v989_v50, %v2314_v3  ;;  %v998_v48 = vadd.f32 %v997_v45, %v995_v32  ;;  %v1640_v32 = vld [vmem:[%s3013_s10 + $0x18] sm:$0xff]  ;;  %v1641_v50 = vld [vmem:[%s3013_s10 + $0x20] sm:$0xff]  ;;  %v1642_v45 = vld [vmem:[%s3013_s10 + $0x28] sm:$0xff] }
  0xf3   :  { %991 = vadd.xlane.f32.xlu1 %v990_v21  ;;  %v999_v51 = vadd.f32 %v998_v48, %v996_v6  ;;  %v1643_v21 = vld [vmem:[%s3013_s10 + $0x30] sm:$0xff]  ;;  %v1644_v6 = vld [vmem:[%s3013_s10 + $0x38] sm:$0xff] }
  0xf5   :  { %1000 = vadd.xlane.f32.xlu0 %v999_v51 }
 0x104   :  { %1056 = vperm.xlu1 %1656, %v1630_v54  }
 0x108   :  { %1109 = vperm.xlu1 %1656, %v1631_v5  }
 0x17c   :  { %v992_v8 = vpop.xlane.xlu1 %991 }
 0x17d   :  { %v1002_v28 = vmul.f32 0.001953125, %v992_v8 }
 0x17e   :  { %v1001_v31 = vpop.xlane.xlu0 %1000 }
 0x17f   :  { %v1004_v37 = vmul.f32 %v1002_v28, %v1002_v28  ;;  %v1003_v42 = vmul.f32 0.001953125, %v1001_v31 }
 0x180   :  { %v2385_v48 = vpop.permute.xlu1 %1056 }
 0x181   :  { %v1005_v58 = vsub.f32 %v1003_v42, %v1004_v37 }
 0x183   :  { %v1006_v7 = vmax.f32 %v1005_v58, 0.0 }
 0x184   :  { %v2387_v51 = vpop.permute.xlu1 %1109 }
 0x185   :  { %v1008_v11 = vadd.f32 1e-05, %v1006_v7 }
 0x187   :  { %1661 = vrsqrt.f32 %v1008_v11 }
 0x194   :  { %v1662_v40 = vpop.eup %1661 }
 0x195   :  { %v1010_v41 = vmul.f32 %v1662_v40, %v1007_v39 }
 0x197   :  { %1016 = vperm.xlu0 %1655, %v1010_v41   ;;  %v1012_v53 = vmul.f32 %v1010_v41, %v1002_v28 }
 0x199   :  { %v1013_v52 = vsub.f32 %v1011_v62, %v1012_v53 }
 0x19b   :  { %1082 = vperm.xlu0 %1655, %v1079_v43   ;;  %1025 = vperm.xlu1 %1656, %v1013_v52  }
 0x19f   :  { %1136 = vperm.xlu0 %1655, %v1632_v27   ;;  %1163 = vperm.xlu1 %1656, %v1633_v38  }
 0x1a3   :  { %1190 = vperm.xlu0 %1655, %v1634_v44   ;;  %1217 = vperm.xlu1 %1656, %v1635_v19  }
 0x1a7   :  { %1244 = vperm.xlu0 %1655, %v1636_v35   ;;  %1271 = vperm.xlu1 %1656, %v1637_v56  }
 0x1ab   :  { %1313 = vperm.xlu0 %1655, %v1310_v36   ;;  %1340 = vperm.xlu1 %1656, %v1638_v47  }
 0x1af   :  { %1367 = vperm.xlu0 %1655, %v1639_v9   ;;  %1394 = vperm.xlu1 %1656, %v1640_v32   ;;  %v1609_v32 = vld [vmem:[%s3014_s2 + $0x8] sm:$0xff] }
 0x1b3   :  { %1421 = vperm.xlu0 %1655, %v1641_v50   ;;  %1448 = vperm.xlu1 %1656, %v1642_v45   ;;  %v46_v50 = vld [vmem:[%s3014_s2] sm:$0xff]  ;;  %v1611_v45 = vld [vmem:[%s3014_s2 + $0x18] sm:$0xff] }
 0x1b7   :  { %1475 = vperm.xlu0 %1655, %v1643_v21   ;;  %1502 = vperm.xlu1 %1656, %v1644_v6   ;;  %v1610_v21 = vld [vmem:[%s3014_s2 + $0x10] sm:$0xff] }
 0x212   :  { %v1017_v54 = vpop.permute.xlu0 %1016 }
 0x213   :  { %v1019_v5 = vmul.f32 %v1017_v54, %v2308_v1  ;;  %v1020_v8 = vmul.f32 %v1017_v54, %v2310_v17  ;;  %v1022_v28 = vmul.f32 %v1017_v54, %v2314_v3  ;;  %v1021_v40 = vmul.f32 %v1017_v54, %v2312_v34 }
 0x216   :  { %v1026_v31 = vpop.permute.xlu1 %1025  ;;  %v2477_v6 = vpop.permute.xlu0 %1082 }
 0x217   :  { %v1028_v37 = vadd.f32 %v1026_v31, %v1019_v5  ;;  %v1029_v42 = vadd.f32 %v1026_v31, %v1020_v8  ;;  %v1031_v58 = vadd.f32 %v1026_v31, %v1022_v28  ;;  %v1030_v53 = vadd.f32 %v1026_v31, %v1021_v40 }
 0x219   :  { %v1032_v7 = vmul.f32 0.5, %v1028_v37  ;;  %v1033_v11 = vmul.f32 0.5, %v1029_v42  ;;  %v1035_v39 = vmul.f32 0.5, %v1031_v58  ;;  %v1034_v38 = vmul.f32 0.5, %v1030_v53 }
 0x21a   :  { %v2479_v54 = vpop.permute.xlu1 %1163  ;;  %v2481_v5 = vpop.permute.xlu0 %1136 }
 0x21b   :  { %1663 = vtanh.f32 %v1032_v7 }
 0x21c   :  { %1665 = vtanh.f32 %v1033_v11 }
 0x21d   :  { %1667 = vtanh.f32 %v1035_v39 }
 0x21e   :  { %1669 = vtanh.f32 %v1034_v38  ;;  %v2483_v8 = vpop.permute.xlu1 %1217  ;;  %v2485_v28 = vpop.permute.xlu0 %1190 }
 0x222   :  { %v2487_v31 = vpop.permute.xlu1 %1271 }
 0x223   :  { %3120 = vst [vmem:[#allocation23_spill] sm:$0xff] %v2487_v31 }
 0x228   :  { %v1664_v41 = vpop.eup %1663 }
 0x229   :  { %v1666_v62 = vpop.eup %1665  ;;  %v1040_v1 = vmul.f32 0.5, %v1664_v41 }
 0x22a   :  { %v1041_v43 = vmul.f32 0.5, %v1666_v62  ;;  %v1668_v17 = vpop.eup %1667 }
 0x22b   :  { %v1044_v52 = vadd.f32 0.5, %v1040_v1  ;;  %v1043_v3 = vmul.f32 0.5, %v1668_v17  ;;  %v1670_v56 = vpop.eup %1669  ;;  %v3129_v17 = vld [vmem:[#allocation7_spill] sm:$0xff] }
 0x22c   :  { %v1045_v27 = vadd.f32 0.5, %v1041_v43  ;;  %v1042_v36 = vmul.f32 0.5, %v1670_v56 }
 0x22d   :  { %v2393_v44 = vmul.f32 %v1044_v52, %v1028_v37  ;;  %v1047_v19 = vadd.f32 0.5, %v1043_v3  ;;  %v2489_v37 = vpop.permute.xlu0 %1244 }
 0x22e   :  { %v2395_v35 = vmul.f32 %v1045_v27, %v1029_v42  ;;  %v1046_v47 = vadd.f32 0.5, %v1042_v36  ;;  %v2491_v42 = vpop.permute.xlu1 %1340  ;;  %v3130_v36 = vld [vmem:[#allocation6_spill] sm:$0xff] }
 0x22f   :  { %1063 = vrot.lane.b32.xlu1 %v2393_v44, %s1679_s29  ;;  %v2401_v34 = vmul.f32 %v1047_v19, %v1031_v58  ;;  %3121 = vst [vmem:[#allocation24_spill] sm:$0xff] %v2491_v42 }
 0x230   :  { %1065 = vrot.lane.b32.xlu0 %v2395_v35, %s1679_s29  ;;  %v2427_v9 = vmul.f32 %v1046_v47, %v1030_v53  ;;  %v1060_v27 = vmul.f32 %v2385_v48, %v2395_v35 }
 0x231   :  { %v2493_v58 = vpop.permute.xlu0 %1313 }
 0x232   :  { %3122 = vst [vmem:[#allocation25_spill] sm:$0xff] %v2493_v58  ;;  %v2495_v7 = vpop.permute.xlu1 %1394  ;;  %v1061_v42 = vmul.f32 %v2385_v48, %v2427_v9 }
 0x233   :  { %1069 = vrot.lane.b32.xlu1 %v2401_v34, %s1679_s29  ;;  %3123 = vst [vmem:[#allocation16_spill] sm:$0xff] %v2495_v7 }
 0x234   :  { %1089 = vrot.lane.b32.xlu0 %v2393_v44, %s1678_s28 }
 0x235   :  { %v2497_v11 = vpop.permute.xlu0 %1367 }
 0x236   :  { %3124 = vst [vmem:[#allocation17_spill] sm:$0xff] %v2497_v11  ;;  %v2499_v39 = vpop.permute.xlu1 %1448 }
 0x237   :  { %1091 = vrot.lane.b32.xlu1 %v2395_v35, %s1678_s28  ;;  %3125 = vst [vmem:[#allocation10_spill] sm:$0xff] %v2499_v39 }
 0x238   :  { %1095 = vrot.lane.b32.xlu0 %v2401_v34, %s1678_s28 }
 0x239   :  { %v2501_v40 = vpop.permute.xlu0 %1421 }
 0x23a   :  { %3126 = vst [vmem:[#allocation12_spill] sm:$0xff] %v2501_v40  ;;  %v2503_v41 = vpop.permute.xlu1 %1502 }
 0x23b   :  { %1116 = vrot.lane.b32.xlu1 %v2393_v44, %s1680_s30  ;;  %3127 = vst [vmem:[#allocation2_spill] sm:$0xff] %v2503_v41 }
 0x23c   :  { %1118 = vrot.lane.b32.xlu0 %v2395_v35, %s1680_s30 }
 0x23d   :  { %v2505_v62 = vpop.permute.xlu0 %1475 }
 0x23e   :  { %3128 = vst [vmem:[#allocation30_spill] sm:$0xff] %v2505_v62 }
 0x23f   :  { %1122 = vrot.lane.b32.xlu1 %v2401_v34, %s1680_s30 }
 0x240   :  { %1143 = vrot.lane.b32.xlu0 %v2393_v44, %s1681_s14 }
 0x243   :  { %1145 = vrot.lane.b32.xlu1 %v2395_v35, %s1681_s14 }
 0x244   :  { %1149 = vrot.lane.b32.xlu0 %v2401_v34, %s1681_s14 }
 0x247   :  { %1170 = vrot.lane.b32.xlu1 %v2393_v44, %s1682_s15 }
 0x248   :  { %1172 = vrot.lane.b32.xlu0 %v2395_v35, %s1682_s15 }
 0x24b   :  { %1174 = vrot.lane.b32.xlu1 %v2427_v9, %s1682_s15 }
 0x24c   :  { %1197 = vrot.lane.b32.xlu0 %v2393_v44, %s1683_s16 }
 0x24f   :  { %1199 = vrot.lane.b32.xlu1 %v2395_v35, %s1683_s16 }
 0x250   :  { %1201 = vrot.lane.b32.xlu0 %v2427_v9, %s1683_s16 }
 0x253   :  { %1224 = vrot.lane.b32.xlu1 %v2393_v44, %s1684_s17 }
 0x254   :  { %1226 = vrot.lane.b32.xlu0 %v2395_v35, %s1684_s17 }
 0x257   :  { %1228 = vrot.lane.b32.xlu1 %v2427_v9, %s1684_s17 }
 0x258   :  { %1067 = vrot.lane.b32.xlu0 %v2427_v9, %s1679_s29 }
 0x25b   :  { %1093 = vrot.lane.b32.xlu1 %v2427_v9, %s1678_s28 }
 0x25c   :  { %1120 = vrot.lane.b32.xlu0 %v2427_v9, %s1680_s30 }
 0x25f   :  { %1147 = vrot.lane.b32.xlu1 %v2427_v9, %s1681_s14 }
 0x260   :  { %1176 = vrot.lane.b32.xlu0 %v2401_v34, %s1682_s15 }
 0x263   :  { %1203 = vrot.lane.b32.xlu1 %v2401_v34, %s1683_s16 }
 0x264   :  { %1230 = vrot.lane.b32.xlu0 %v2401_v34, %s1684_s17 }
 0x267   :  { %1253 = vrot.lane.b32.xlu1 %v2395_v35, %s1685_s20 }
 0x268   :  { %1251 = vrot.lane.b32.xlu0 %v2393_v44, %s1685_s20 }
 0x26b   :  { %98 = vperm.xlu1 %1656, %v1609_v32  }
 0x26c   :  { %1255 = vrot.lane.b32.xlu0 %v2427_v9, %s1685_s20 }
 0x26f   :  { %1257 = vrot.lane.b32.xlu1 %v2401_v34, %s1685_s20 }
 0x270   :  { %49 = vperm.xlu0 %1655, %v46_v50   ;;  %v1059_v50 = vmul.f32 %v2385_v48, %v2393_v44 }
 0x273   :  { %192 = vperm.xlu1 %1656, %v1611_v45  }
 0x274   :  { %145 = vperm.xlu0 %1655, %v1610_v21  }
 0x2a1   :  { %v1064_v53 = vpop.permute.xlu1 %1063 }
 0x2a2   :  { %v2507_v1 = vpop.permute.xlu0 %1065 }
 0x2a3   :  { %v1073_v43 = vsel %vm333_vm0, %v1064_v53, %v2507_v1 }
 0x2a4   :  { %v1076_v52 = vmul.f32 %v1073_v43, %v3129_v17 }
 0x2a5   :  { %v2513_v3 = vpop.permute.xlu1 %1069 }
 0x2a6   :  { %v1086_v38 = vmul.f32 %v2477_v6, %v1076_v52  ;;  %v1090_v19 = vpop.permute.xlu0 %1089  ;;  %v1074_v56 = vsel %vm333_vm0, %v2513_v3, %v1064_v53 }
 0x2a7   :  { %v1075_v47 = vmul.f32 %v1074_v56, %v3130_v36 }
 0x2a8   :  { %v1279_v32 = vadd.f32 %v1086_v38, %v1060_v27  ;;  %v3131_v27 = vld [vmem:[#allocation8_spill] sm:$0xff] }
 0x2a9   :  { %v1085_v45 = vmul.f32 %v2477_v6, %v1075_v47  ;;  %v2525_v21 = vpop.permute.xlu1 %1091  ;;  %v3132_v47 = vld [vmem:[#allocation9_spill] sm:$0xff] }
 0x2aa   :  { %v2527_v43 = vpop.permute.xlu0 %1095  ;;  %v1099_v17 = vsel %vm382_vm1, %v1090_v19, %v2525_v21 }
 0x2ab   :  { %v1278_v35 = vadd.f32 %v1085_v45, %v1059_v50  ;;  %v1100_v53 = vsel %vm382_vm1, %v2527_v43, %v1090_v19  ;;  %v1102_v38 = vmul.f32 %v1099_v17, %v3131_v27  ;;  %v3133_v17 = vld [vmem:[#allocation11_spill] sm:$0xff] }
 0x2ac   :  { %v1101_v50 = vmul.f32 %v1100_v53, %v3132_v47 }
 0x2ad   :  { %v1117_v52 = vpop.permute.xlu1 %1116  ;;  %v1113_v41 = vmul.f32 %v2387_v51, %v1102_v38 }
 0x2ae   :  { %v2536_v56 = vpop.permute.xlu0 %1118  ;;  %v1112_v39 = vmul.f32 %v2387_v51, %v1101_v50 }
 0x2af   :  { %v1126_v44 = vsel %vm433_vm2, %v1117_v52, %v2536_v56 }
 0x2b0   :  { %v1129_v36 = vmul.f32 %v1126_v44, %v1960_v10 }
 0x2b1   :  { %v2543_v45 = vpop.permute.xlu1 %1122 }
 0x2b2   :  { %v1140_v33 = vmul.f32 %v2481_v5, %v1129_v36  ;;  %v1144_v30 = vpop.permute.xlu0 %1143  ;;  %v1127_v19 = vsel %vm433_vm2, %v2543_v45, %v1117_v52 }
 0x2b3   :  { %v1128_v27 = vmul.f32 %v1127_v19, %v3133_v17 }
 0x2b4   :  { %v1283_v62 = vadd.f32 %v1140_v33, %v1113_v41  ;;  %v2570_v41 = vld [vmem:[%s3007_s0 + $0x8] sm:$0xff] }
 0x2b5   :  { %v1139_v10 = vmul.f32 %v2481_v5, %v1128_v27  ;;  %v2553_v44 = vpop.permute.xlu1 %1145  ;;  %v65_v27 = vrot.slane %v2570_v41, %v3119_v55 }
 0x2b6   :  { %v2555_v53 = vadd.f32 %v1283_v62, %v1279_v32  ;;  %v2557_v47 = vpop.permute.xlu0 %1149  ;;  %v112_v62 = vrot.slane %v2570_v41, %v1914_v59  ;;  %v2579_v32 = vld [vmem:[%s3007_s0] sm:$0xff] }
 0x2b7   :  { %v1282_v38 = vadd.f32 %v1139_v10, %v1112_v39  ;;  %v116_v39 = vrot.slane %v2570_v41, %v2268_v60  ;;  %v108_v50 = vrot.slane %v2579_v32, %v2268_v60  ;;  %v69_v10 = vrot.slane %v2570_v41, %v2259_v4 }
 0x2b8   :  { %3134 = vst [vmem:[#allocation3_spill] sm:$0xff] %v2555_v53  ;;  %v61_v11 = vrot.slane %v2579_v32, %v2259_v4  ;;  %v1062_v60 = vmul.f32 %v2385_v48, %v2401_v34  ;;  %v2602_v53 = vrot.slane %v112_v62, %v1914_v59  ;;  %v1154_v9 = vsel %vm484_vm3, %v2557_v47, %v1144_v30 }
 0x2b9   :  { %v2559_v36 = vadd.f32 %v1282_v38, %v1278_v35  ;;  %v2561_v40 = vpop.permute.xlu1 %1170  ;;  %v104_v35 = vrot.slane %v2579_v32, %v1914_v59  ;;  %v57_v38 = vrot.slane %v2579_v32, %v3119_v55  ;;  %v2605_v61 = vrot.slane %v116_v39, %v1914_v59 }
 0x2ba   :  { %v1173_v7 = vpop.permute.xlu0 %1172  ;;  %3136 = vst [vmem:[#allocation5_spill] sm:$0xff] %v2602_v53  ;;  %v2620_v62 = vrot.slane %v65_v27, %v3119_v55  ;;  %v2623_v39 = vrot.slane %v69_v10, %v3119_v55  ;;  %v163_v10 = vrot.slane %v2570_v41, %v2271_v13 }
 0x2bb   :  { %3135 = vst [vmem:[#allocation4_spill] sm:$0xff] %v2559_v36  ;;  %3137 = vst [vmem:[#allocation7_spill] sm:$0xff] %v2605_v61  ;;  %v2608_v31 = vrot.slane %v104_v35, %v1914_v59  ;;  %v2611_v36 = vrot.slane %v108_v50, %v1914_v59  ;;  %v1180_v48 = vsel %vm535_vm4, %v2561_v40, %v1173_v7 }
 0x2bc   :  { %3139 = vst [vmem:[#allocation8_spill] sm:$0xff] %v2620_v62  ;;  %3140 = vst [vmem:[#allocation9_spill] sm:$0xff] %v2623_v39  ;;  %v2629_v50 = vrot.slane %v57_v38, %v3119_v55  ;;  %v2632_v61 = vrot.slane %v61_v11, %v3119_v55  ;;  %v1155_v62 = vmul.f32 %v1154_v9, %v1976_v15 }
 0x2bd   :  { %v2563_v52 = vpop.permute.xlu1 %1174  ;;  %3138 = vst [vmem:[#allocation6_spill] sm:$0xff] %v2611_v36  ;;  %v1153_v11 = vsel %vm484_vm3, %v1144_v30, %v2553_v44  ;;  %v1182_v53 = vmul.f32 %v1180_v48, %v1980_v16 }
 0x2be   :  { %v2565_v19 = vpop.permute.xlu0 %1197  ;;  %3141 = vst [vmem:[#allocation11_spill] sm:$0xff] %v2629_v50  ;;  %3142 = vst [vmem:[#allocation32_spill] sm:$0xff] %v2632_v61 }
 0x2c1   :  { %v1200_v33 = vpop.permute.xlu1 %1199 }
 0x2c2   :  { %v2585_v17 = vpop.permute.xlu0 %1201  ;;  %v1207_v27 = vsel %vm586_vm5, %v2565_v19, %v1200_v33 }
 0x2c3   :  { %v1209_v16 = vmul.f32 %v1207_v27, %v1991_v22  ;;  %v1166_v27 = vmul.f32 %v2479_v54, %v1155_v62  ;;  %v3144_v62 = vld [vmem:[#allocation14_spill] sm:$0xff] }
 0x2c5   :  { %v2599_v58 = vpop.permute.xlu1 %1224 }
 0x2c6   :  { %v1227_v34 = vpop.permute.xlu0 %1226 }
 0x2c7   :  { %v1234_v35 = vsel %vm637_vm6, %v2599_v58, %v1227_v34 }
 0x2c8   :  { %v1236_v61 = vmul.f32 %v1234_v35, %v1998_v24  ;;  %v1206_v35 = vsel %vm586_vm5, %v1200_v33, %v2585_v17 }
 0x2c9   :  { %v2651_v50 = vpop.permute.xlu1 %1228 }
 0x2ca   :  { %v1068_v36 = vpop.permute.xlu0 %1067  ;;  %v1233_v39 = vsel %vm637_vm6, %v1227_v34, %v2651_v50  ;;  %v1156_v34 = vmul.f32 %v1153_v11, %v1973_v14  ;;  %v1247_v15 = vmul.f32 %v2489_v37, %v1236_v61  ;;  %v1179_v14 = vsel %vm535_vm4, %v1173_v7, %v2563_v52 }
 0x2cb   :  { %v1071_v24 = vsel %vm333_vm0, %v1068_v36, %v2513_v3  ;;  %v1072_v9 = vsel %vm333_vm0, %v2507_v1, %v1068_v36  ;;  %v1193_v3 = vmul.f32 %v2485_v28, %v1182_v53  ;;  %v3143_v1 = vld [vmem:[#allocation15_spill] sm:$0xff]  ;;  %v1210_v53 = vmul.f32 %v1206_v35, %v3144_v62  ;;  %v3146_v62 = vld [vmem:[#allocation20_spill] sm:$0xff] }
 0x2cc   :  { %v1077_v30 = vmul.f32 %v1072_v9, %v3108_v20  ;;  %v1078_v22 = vmul.f32 %v1071_v24, %v3109_v0  ;;  %v1237_v36 = vmul.f32 %v1233_v39, %v3143_v1  ;;  %v1220_v61 = vmul.f32 %v2483_v8, %v1209_v16  ;;  %v3145_v9 = vld [vmem:[#allocation13_spill] sm:$0xff] }
 0x2cd   :  { %v1094_v38 = vpop.permute.xlu1 %1093  ;;  %v1183_v35 = vmul.f32 %v1179_v14, %v3145_v9  ;;  %v1286_v14 = vadd.f32 %v1193_v3, %v1166_v27  ;;  %v3149_v9 = vld [vmem:[#allocation29_spill] sm:$0xff] }
 0x2ce   :  { %v1087_v11 = vmul.f32 %v2477_v6, %v1077_v30  ;;  %v1088_v33 = vmul.f32 %v2477_v6, %v1078_v22  ;;  %v1121_v20 = vpop.permute.xlu0 %1120  ;;  %v1097_v0 = vsel %vm382_vm1, %v1094_v38, %v2527_v43  ;;  %v1098_v43 = vsel %vm382_vm1, %v2525_v21, %v1094_v38  ;;  %v3147_v21 = vld [vmem:[#allocation18_spill] sm:$0xff] }
 0x2cf   :  { %v1124_v39 = vsel %vm433_vm2, %v1121_v20, %v2543_v45  ;;  %v1125_v7 = vsel %vm433_vm2, %v2536_v56, %v1121_v20  ;;  %v1290_v16 = vadd.f32 %v1247_v15, %v1220_v61  ;;  %v1248_v22 = vmul.f32 %v2489_v37, %v1237_v36 }
 0x2d0   :  { %v2697_v30 = vadd.f32 %v1087_v11, %v1061_v42  ;;  %v1281_v6 = vadd.f32 %v1088_v33, %v1062_v60  ;;  %v1131_v24 = vmul.f32 %v1124_v39, %v3103_v23  ;;  %v1104_v45 = vmul.f32 %v1097_v0, %v3101_v29 }
 0x2d1   :  { %v1148_v1 = vpop.permute.xlu1 %1147  ;;  %v1130_v48 = vmul.f32 %v1125_v7, %v3146_v62  ;;  %v1103_v38 = vmul.f32 %v1098_v43, %v3147_v21  ;;  %v1221_v11 = vmul.f32 %v2483_v8, %v1210_v53  ;;  %v1298_v7 = vadd.f32 %v1290_v16, %v1286_v14  ;;  %v3148_v53 = vld [vmem:[#allocation28_spill] sm:$0xff]  ;;  %v3150_v16 = vld [vmem:[#allocation26_spill] sm:$0xff] }
 0x2d2   :  { %v1142_v42 = vmul.f32 %v2481_v5, %v1131_v24  ;;  %v1177_v56 = vpop.permute.xlu0 %1176  ;;  %v1151_v23 = vsel %vm484_vm3, %v1148_v1, %v2557_v47  ;;  %v1152_v60 = vsel %vm484_vm3, %v2553_v44, %v1148_v1  ;;  %v1115_v15 = vmul.f32 %v2387_v51, %v1104_v45  ;;  %v3151_v45 = vld [vmem:[#allocation27_spill] sm:$0xff] }
 0x2d3   :  { %v1178_v29 = vsel %vm535_vm4, %v2563_v52, %v1177_v56  ;;  %v1181_v36 = vsel %vm535_vm4, %v1177_v56, %v2561_v40  ;;  %v1167_v44 = vmul.f32 %v2479_v54, %v1156_v34  ;;  %v1157_v0 = vmul.f32 %v1152_v60, %v3104_v25 }
 0x2d4   :  { %v1184_v47 = vmul.f32 %v1178_v29, %v3106_v63  ;;  %v1185_v33 = vmul.f32 %v1181_v36, %v3107_v49  ;;  %v1285_v20 = vadd.f32 %v1142_v42, %v1115_v15  ;;  %v1158_v61 = vmul.f32 %v1151_v23, %v3105_v2  ;;  %v3153_v29 = vld [vmem:[#allocation4_spill] sm:$0xff] }
 0x2d5   :  { %v1204_v39 = vpop.permute.xlu1 %1203  ;;  %v1194_v52 = vmul.f32 %v2485_v28, %v1183_v35  ;;  %v1291_v24 = vadd.f32 %v1248_v22, %v1221_v11  ;;  %v1141_v40 = vmul.f32 %v2481_v5, %v1130_v48  ;;  %v1114_v3 = vmul.f32 %v2387_v51, %v1103_v38 }
 0x2d6   :  { %v1231_v27 = vpop.permute.xlu0 %1230  ;;  %v1297_v63 = vadd.f32 %v1285_v20, %v1281_v6  ;;  %v1195_v2 = vmul.f32 %v2485_v28, %v1184_v47  ;;  %v1196_v34 = vmul.f32 %v2485_v28, %v1185_v33  ;;  %v1168_v48 = vmul.f32 %v2479_v54, %v1157_v0 }
 0x2d7   :  { %v1232_v49 = vsel %vm637_vm6, %v2651_v50, %v1231_v27  ;;  %v1235_v25 = vsel %vm637_vm6, %v1231_v27, %v2599_v58  ;;  %v1169_v51 = vmul.f32 %v2479_v54, %v1158_v61  ;;  %v1205_v50 = vsel %vm586_vm5, %v2585_v17, %v1204_v39 }
 0x2d8   :  { %v1238_v43 = vmul.f32 %v1232_v49, %v3148_v53  ;;  %v1239_v5 = vmul.f32 %v1235_v25, %v3149_v9  ;;  %v1208_v58 = vsel %vm586_vm5, %v1204_v39, %v2565_v19  ;;  %v1211_v22 = vmul.f32 %v1205_v50, %v3150_v16  ;;  %v3159_v49 = vld [vmem:[#allocation3_spill] sm:$0xff] }
 0x2d9   :  { %v1254_v6 = vpop.permute.xlu1 %1253  ;;  %v1212_v1 = vmul.f32 %v1208_v58, %v3151_v45  ;;  %v1287_v54 = vadd.f32 %v1194_v52, %v1167_v44  ;;  %v1284_v42 = vadd.f32 %v1141_v40, %v1114_v3  ;;  %v3152_v19 = vrot.slane %v2570_v41, %v3110_v46  ;;  %v3158_v3 = vld [vmem:[#allocation31_spill] sm:$0xff]  ;;  %v3164_v45 = vld [vmem:[#allocation22_spill] sm:$0xff] }
 0x2da   :  { %v1249_v35 = vmul.f32 %v2489_v37, %v1238_v43  ;;  %v1250_v28 = vmul.f32 %v2489_v37, %v1239_v5  ;;  %v2753_v62 = vpop.permute.xlu0 %1251  ;;  %v1222_v37 = vmul.f32 %v2483_v8, %v1211_v22  ;;  %v2771_v21 = vrot.slane %v163_v10, %v3110_v46 }
 0x2db   :  { %v1261_v17 = vsel %vm688_vm7, %v2753_v62, %v1254_v6  ;;  %v2762_v56 = vrot.slane %v3152_v19, %v3110_v46  ;;  %v1223_v23 = vmul.f32 %v2483_v8, %v1212_v1  ;;  %v1299_v38 = vadd.f32 %v1291_v24, %v1287_v54 }
 0x2dc   :  { %v1263_v60 = vmul.f32 %v1261_v17, %v3115_v12  ;;  %v1288_v15 = vadd.f32 %v1195_v2, %v1168_v48  ;;  %v1302_v36 = vadd.f32 %v1298_v7, %v3153_v29  ;;  %v3154_v14 = vrot.slane %v2579_v32, %v3110_v46  ;;  %v3155_v12 = vld [vmem:[#allocation23_spill] sm:$0xff]  ;;  %v3166_v17 = vld [vmem:[#allocation17_spill] sm:$0xff] }
 0x2dd   :  { %v1289_v47 = vadd.f32 %v1196_v34, %v1169_v51  ;;  %v1292_v8 = vadd.f32 %v1249_v35, %v1222_v37  ;;  %v1293_v33 = vadd.f32 %v1250_v28, %v1223_v23  ;;  %v1296_v0 = vadd.f32 %v1284_v42, %v2697_v30  ;;  %v3167_v37 = vld [vmem:[#allocation16_spill] sm:$0xff] }
 0x2de   :  { %v2778_v11 = vrot.slane %v3154_v14, %v3110_v46  ;;  %v1274_v44 = vmul.f32 %v3155_v12, %v1263_v60  ;;  %v1256_v20 = vpop.permute.xlu0 %1255  ;;  %v3156_v61 = vrot.slane %v2579_v32, %v2271_v13  ;;  %v3157_v52 = vrot.slane %v2570_v41, %v3112_v18  ;;  %v3168_v60 = vld [vmem:[#allocation12_spill] sm:$0xff] }
 0x2df   :  { %v1260_v10 = vsel %vm688_vm7, %v1254_v6, %v1256_v20  ;;  %v1300_v24 = vadd.f32 %v1292_v8, %v1288_v15  ;;  %v1301_v40 = vadd.f32 %v1293_v33, %v1289_v47  ;;  %v1303_v25 = vadd.f32 %v1299_v38, %v3159_v49  ;;  %v3169_v33 = vld [vmem:[#allocation6_spill] sm:$0xff] }
 0x2e0   :  { %v2788_v39 = vrot.slane %v3156_v61, %v3110_v46  ;;  %v2794_v7 = vrot.slane %v3157_v52, %v3112_v18  ;;  %v1306_v27 = vadd.f32 %v1302_v36, %v1274_v44  ;;  %v1264_v30 = vmul.f32 %v1260_v10, %v3158_v3  ;;  %v3171_v61 = vld [vmem:[#allocation7_spill] sm:$0xff] }
 0x2e1   :  { %v3160_v2 = vrot.slane %v2570_v41, %v2281_v26  ;;  %v3161_v53 = vrot.slane %v2579_v32, %v3112_v18  ;;  %v3162_v9 = vrot.slane %v2579_v32, %v2281_v26  ;;  %v2813_v51 = vadd.f32 %v1300_v24, %v1296_v0  ;;  %v3163_v32 = vld [vmem:[#allocation25_spill] sm:$0xff] }
 0x2e2   :  { %v1275_v48 = vmul.f32 %v3155_v12, %v1264_v30  ;;  %v2815_v50 = vadd.f32 %v1301_v40, %v1297_v63  ;;  %v1319_v41 = vrot.slane %v1306_v27, %v3119_v55  ;;  %v1346_v58 = vrot.slane %v1306_v27, %v1914_v59  ;;  %v3165_v63 = vld [vmem:[#allocation24_spill] sm:$0xff]  ;;  %v3170_v0 = vld [vmem:[#allocation5_spill] sm:$0xff] }
 0x2e3   :  { %v2802_v34 = vrot.slane %v3160_v2, %v3112_v18  ;;  %v218_v43 = vrot.slane %v3161_v53, %v3112_v18  ;;  %v222_v5 = vrot.slane %v3162_v9, %v3112_v18  ;;  %v1373_v6 = vrot.slane %v1306_v27, %v3110_v46 }
 0x2e4   :  { %v1400_v35 = vrot.slane %v1306_v27, %v3112_v18  ;;  %v1427_v28 = vrot.slane %v1306_v27, %v2259_v4  ;;  %v2822_v16 = vadd.f32 %v1303_v25, %v1275_v48  ;;  %v1332_v22 = vmul.f32 %v1319_v41, %v3163_v32  ;;  %v3172_v25 = vld [vmem:[#allocation10_spill] sm:$0xff] }
 0x2e5   :  { %v1454_v1 = vrot.slane %v1306_v27, %v3164_v45  ;;  %v1481_v54 = vrot.slane %v1306_v27, %v2271_v13  ;;  %v1359_v42 = vmul.f32 %v1346_v58, %v3165_v63  ;;  %v2829_v19 = vmul.f32 %v1373_v6, %v3166_v17  ;;  %v3173_v48 = vld [vmem:[#allocation30_spill] sm:$0xff] }
 0x2e6   :  { %v2832_v23 = vmul.f32 %v1400_v35, %v3167_v37  ;;  %v2835_v38 = vmul.f32 %v1427_v28, %v3168_v60  ;;  %v99_v15 = vpop.permute.xlu1 %98  ;;  %v1323_v29 = vrot.slane %v2822_v16, %v3119_v55  ;;  %v1350_v36 = vrot.slane %v2822_v16, %v1914_v59 }
 0x2e7   :  { %v1377_v14 = vrot.slane %v2822_v16, %v3110_v46  ;;  %v1404_v47 = vrot.slane %v2822_v16, %v3112_v18  ;;  %v137_v8 = vmul.f32 %v2608_v31, %v99_v15  ;;  %v138_v44 = vmul.f32 %v3169_v33, %v99_v15 }
 0x2e8   :  { %v139_v10 = vmul.f32 %v3170_v0, %v99_v15  ;;  %v140_v52 = vmul.f32 %v3171_v61, %v99_v15  ;;  %v1333_v24 = vmul.f32 %v1323_v29, %v3163_v32  ;;  %v1360_v40 = vmul.f32 %v1350_v36, %v3165_v63  ;;  %v3181_v0 = vld [vmem:[#allocation19_spill] sm:$0xff]  ;;  %v3182_v61 = vld [vmem:[#allocation21_spill] sm:$0xff] }
 0x2e9   :  { %v2852_v3 = vmul.f32 %v1377_v14, %v3166_v17  ;;  %v2855_v30 = vmul.f32 %v1404_v47, %v3167_v37  ;;  %v1431_v49 = vrot.slane %v2822_v16, %v2259_v4  ;;  %v1458_v31 = vrot.slane %v2822_v16, %v3164_v45  ;;  %v3178_v14 = vld [vmem:[#allocation32_spill] sm:$0xff]  ;;  %v3180_v47 = vld [vmem:[#allocation9_spill] sm:$0xff] }
 0x2ea   :  { %v2862_v2 = vmul.f32 %v1454_v1, %v3172_v25  ;;  %v1485_v53 = vrot.slane %v2822_v16, %v2271_v13  ;;  %v1258_v9 = vpop.permute.xlu1 %1257  ;;  %v2867_v41 = vmul.f32 %v1481_v54, %v3173_v48  ;;  %v1508_v58 = vrot.slane %v1306_v27, %v2281_v26  ;;  %v3177_v27 = vld [vmem:[#allocation11_spill] sm:$0xff] }
 0x2eb   :  { %v1512_v6 = vrot.slane %v2822_v16, %v2281_v26  ;;  %v2872_v35 = vadd.f32 %v1359_v42, %v1332_v22  ;;  %v50_v28 = vpop.permute.xlu0 %49  ;;  %v1259_v15 = vsel %vm688_vm7, %v1256_v20, %v1258_v9  ;;  %v1262_v1 = vsel %vm688_vm7, %v1258_v9, %v2753_v62  ;;  %v3179_v22 = vld [vmem:[#allocation8_spill] sm:$0xff]  ;;  %v3183_v62 = vld [vmem:[#allocation2_spill] sm:$0xff] }
 0x2ec   :  { %3174 = vst [vmem:[#allocation15_spill] sm:$0xff] %v2867_v41  ;;  %v2880_v29 = vmul.f32 %v1431_v49, %v3168_v60  ;;  %v2883_v54 = vmul.f32 %v1458_v31, %v3172_v25  ;;  %v90_v36 = vmul.f32 %v3177_v27, %v50_v28  ;;  %v91_v16 = vmul.f32 %v3178_v14, %v50_v28 }
 0x2ed   :  { %3175 = vst [vmem:[#allocation14_spill] sm:$0xff] %v2872_v35  ;;  %v92_v42 = vmul.f32 %v3179_v22, %v50_v28  ;;  %v93_v33 = vmul.f32 %v3180_v47, %v50_v28  ;;  %v1265_v20 = vmul.f32 %v1259_v15, %v3181_v0  ;;  %v1266_v35 = vmul.f32 %v1262_v1, %v3182_v61 }
 0x2ee   :  { %3176 = vst [vmem:[#allocation13_spill] sm:$0xff] %v2883_v54  ;;  %v2892_v57 = vmul.f32 %v1485_v53, %v3173_v48  ;;  %v2895_v49 = vmul.f32 %v1508_v58, %v3183_v62  ;;  %v235_v31 = vadd.f32 %v137_v8, %v90_v36  ;;  %v236_v9 = vadd.f32 %v138_v44, %v91_v16  ;;  %v193_v54 = vpop.permute.xlu1 %192 }
 0x2ef   :  { %v237_v41 = vadd.f32 %v139_v10, %v92_v42  ;;  %v238_v27 = vadd.f32 %v140_v52, %v93_v33  ;;  %v1276_v14 = vmul.f32 %v3155_v12, %v1265_v20  ;;  %v1277_v22 = vmul.f32 %v3155_v12, %v1266_v35  ;;  %v146_v28 = vpop.permute.xlu0 %145 }
 0x2f0   :  { %v231_v47 = vmul.f32 %v218_v43, %v193_v54  ;;  %v232_v15 = vmul.f32 %v222_v5, %v193_v54  ;;  %v184_v1 = vmul.f32 %v2778_v11, %v146_v28  ;;  %v185_v53 = vmul.f32 %v2788_v39, %v146_v28 }
 0x2f1   :  { %v186_v0 = vmul.f32 %v2762_v56, %v146_v28  ;;  %v187_v58 = vmul.f32 %v2771_v21, %v146_v28  ;;  %v1308_v8 = vadd.f32 %v2813_v51, %v1276_v14  ;;  %v1309_v44 = vadd.f32 %v2815_v50, %v1277_v22 }
 0x2f2   :  { %v233_v10 = vmul.f32 %v2794_v7, %v193_v54  ;;  %v234_v52 = vmul.f32 %v2802_v34, %v193_v54  ;;  %v239_v12 = vadd.f32 %v231_v47, %v184_v1  ;;  %v240_v35 = vadd.f32 %v232_v15, %v185_v53 }
 0x2f3   :  { %v2908_v43 = vmul.f32 %v1512_v6, %v3183_v62  ;;  %v2910_v11 = vadd.f32 %v1360_v40, %v1333_v24  ;;  %v1327_v56 = vrot.slane %v1308_v8, %v3119_v55  ;;  %v1331_v21 = vrot.slane %v1309_v44, %v3119_v55 }
 0x2f4   :  { %v241_v39 = vadd.f32 %v233_v10, %v186_v0  ;;  %v242_v5 = vadd.f32 %v234_v52, %v187_v58  ;;  %v2914_v51 = vadd.f32 %v239_v12, %v235_v31  ;;  %v2916_v50 = vadd.f32 %v240_v35, %v236_v9 }
 0x2f5   :  { %v1354_v7 = vrot.slane %v1308_v8, %v1914_v59  ;;  %v1358_v34 = vrot.slane %v1309_v44, %v1914_v59  ;;  %v1334_v24 = vmul.f32 %v1327_v56, %v3163_v32  ;;  %v1335_v40 = vmul.f32 %v1331_v21, %v3163_v32 }
 0x2f6   :  { %v2920_v54 = vadd.f32 %v241_v39, %v237_v41  ;;  %v2922_v6 = vadd.f32 %v242_v5, %v238_v27  ;;  %v247_v36 = vadd.f32 %v2916_v50, %v2914_v51  ;;  %v252_v55 = vmul.f32 %v2914_v51, %v2914_v51 }
 0x2f7   :  { %v253_v16 = vmul.f32 %v2916_v50, %v2916_v50  ;;  %v1361_v42 = vmul.f32 %v1354_v7, %v3165_v63  ;;  %v1362_v33 = vmul.f32 %v1358_v34, %v3165_v63  ;;  %v1381_v32 = vrot.slane %v1308_v8, %v3110_v46  ;;  %v3184_v7 = vld [vmem:[#allocation13_spill] sm:$0xff] }
 0x2f8   :  { %v254_v59 = vmul.f32 %v2920_v54, %v2920_v54  ;;  %v255_v41 = vmul.f32 %v2922_v6, %v2922_v6  ;;  %v248_v20 = vadd.f32 %v247_v36, %v2920_v54  ;;  %v1385_v31 = vrot.slane %v1309_v44, %v3110_v46 }
 0x2f9   :  { %v256_v61 = vadd.f32 %v253_v16, %v252_v55  ;;  %v1408_v9 = vrot.slane %v1308_v8, %v3112_v18  ;;  %v1388_v27 = vmul.f32 %v1381_v32, %v3166_v17  ;;  %v1412_v14 = vrot.slane %v1309_v44, %v3112_v18 }
 0x2fa   :  { %v1435_v22 = vrot.slane %v1308_v8, %v2259_v4  ;;  %v1439_v28 = vrot.slane %v1309_v44, %v2259_v4  ;;  %v249_v47 = vadd.f32 %v248_v20, %v2922_v6  ;;  %v1389_v15 = vmul.f32 %v1385_v31, %v3166_v17 }
 0x2fb   :  { %v257_v63 = vadd.f32 %v256_v61, %v254_v59  ;;  %v1415_v1 = vmul.f32 %v1408_v9, %v3167_v37  ;;  %v1416_v53 = vmul.f32 %v1412_v14, %v3167_v37  ;;  %v1462_v58 = vrot.slane %v1308_v8, %v3164_v45 }
 0x2fc   :  { %v1442_v46 = vmul.f32 %v1435_v22, %v3168_v60  ;;  %v1443_v0 = vmul.f32 %v1439_v28, %v3168_v60  ;;  %250 = vadd.xlane.f32.xlu0 %v249_v47  ;;  %v1466_v10 = vrot.slane %v1309_v44, %v3164_v45  ;;  %v1489_v4 = vrot.slane %v1308_v8, %v2271_v13 }
 0x2fd   :  { %v258_v18 = vadd.f32 %v257_v63, %v255_v41  ;;  %v1493_v52 = vrot.slane %v1309_v44, %v2271_v13  ;;  %v1469_v17 = vmul.f32 %v1462_v58, %v3172_v25  ;;  %v1516_v12 = vrot.slane %v1308_v8, %v2281_v26 }
 0x2fe   :  { %v1520_v37 = vrot.slane %v1309_v44, %v2281_v26  ;;  %v1527_v35 = vadd.f32 %v1361_v42, %v1334_v24  ;;  %v1470_v39 = vmul.f32 %v1466_v10, %v3172_v25  ;;  %v1496_v60 = vmul.f32 %v1489_v4, %v3173_v48 }
 0x2ff   :  { %v1497_v5 = vmul.f32 %v1493_v52, %v3173_v48  ;;  %v1528_v56 = vadd.f32 %v1362_v33, %v1335_v40  ;;  %v1523_v45 = vmul.f32 %v1516_v12, %v3183_v62  ;;  %v1529_v13 = vadd.f32 %v2832_v23, %v2829_v19  ;;  %v3185_v40 = vld [vmem:[#allocation15_spill] sm:$0xff] }
 0x300   :  { %v1524_v21 = vmul.f32 %v1520_v37, %v3183_v62  ;;  %v1530_v8 = vadd.f32 %v2855_v30, %v2852_v3  ;;  %259 = vadd.xlane.f32.xlu0 %v258_v18  ;;  %v1531_v26 = vadd.f32 %v1415_v1, %v1388_v27  ;;  %v1532_v44 = vadd.f32 %v1416_v53, %v1389_v15  ;;  %v3186_v3 = vld [vmem:[#allocation14_spill] sm:$0xff] }
 0x301   :  { %v1533_v25 = vadd.f32 %v2862_v2, %v2835_v38  ;;  %v1534_v48 = vadd.f32 %v3184_v7, %v2880_v29  ;;  %v1535_v34 = vadd.f32 %v1469_v17, %v1442_v46  ;;  %v1536_v24 = vadd.f32 %v1470_v39, %v1443_v0  ;;  %v266_v37 = vld [vmem:[%s3015_s3] sm:$0xff] }
 0x302   :  { %v1537_v62 = vadd.f32 %v2895_v49, %v3185_v40  ;;  %v1538_v19 = vadd.f32 %v2908_v43, %v2892_v57  ;;  %v1539_v23 = vadd.f32 %v1523_v45, %v1496_v60  ;;  %v1540_v36 = vadd.f32 %v1524_v21, %v1497_v5  ;;  %v270_v5 = vld [vmem:[%s3016_s4] sm:$0xff] }
 0x303   :  { %v1541_v30 = vadd.f32 %v1529_v13, %v3186_v3  ;;  %v1542_v55 = vadd.f32 %v1530_v8, %v2910_v11  ;;  %v1543_v16 = vadd.f32 %v1531_v26, %v1527_v35  ;;  %v1544_v42 = vadd.f32 %v1532_v44, %v1528_v56  ;;  %v1572_v21 = vld [vmem:[%s3017_s11] sm:$0xff] }
 0x304   :  { %v1545_v38 = vadd.f32 %v1537_v62, %v1533_v25  ;;  %v1546_v2 = vadd.f32 %v1538_v19, %v1534_v48  ;;  %v1547_v59 = vadd.f32 %v1539_v23, %v1535_v34  ;;  %v1548_v29 = vadd.f32 %v1540_v36, %v1536_v24  ;;  %v1576_v26 = vld [vmem:[%s3018_s12] sm:$0xff] }
 0x306   :  { %v1549_v41 = vadd.f32 %v1545_v38, %v1541_v30  ;;  %v1550_v33 = vadd.f32 %v1546_v2, %v1542_v55  ;;  %v1551_v32 = vadd.f32 %v1547_v59, %v1543_v16  ;;  %v1552_v20 = vadd.f32 %v1548_v29, %v1544_v42 }
 0x308   :  { %v1553_v49 = vadd.f32 %v1550_v33, %v1549_v41  ;;  %v1558_v61 = vmul.f32 %v1549_v41, %v1549_v41  ;;  %v1559_v31 = vmul.f32 %v1550_v33, %v1550_v33  ;;  %v1560_v57 = vmul.f32 %v1551_v32, %v1551_v32 }
 0x309   :  { %v1561_v14 = vmul.f32 %v1552_v20, %v1552_v20 }
 0x30a   :  { %v1554_v43 = vadd.f32 %v1553_v49, %v1551_v32  ;;  %v1562_v9 = vadd.f32 %v1559_v31, %v1558_v61 }
 0x30c   :  { %v1555_v27 = vadd.f32 %v1554_v43, %v1552_v20  ;;  %v1563_v22 = vadd.f32 %v1562_v9, %v1560_v57 }
 0x30e   :  { %1556 = vadd.xlane.f32.xlu1 %v1555_v27  ;;  %v1564_v11 = vadd.f32 %v1563_v22, %v1561_v14 }
 0x310   :  { %1565 = vadd.xlane.f32.xlu0 %v1564_v11 }
 0x385   :  { %v251_v28 = vpop.xlane.xlu0 %250 }
 0x386   :  { %v261_v47 = vmul.f32 0.001953125, %v251_v28 }
 0x388   :  { %v263_v15 = vmul.f32 %v261_v47, %v261_v47 }
 0x389   :  { %v260_v63 = vpop.xlane.xlu0 %259 }
 0x38a   :  { %v262_v1 = vmul.f32 0.001953125, %v260_v63 }
 0x38c   :  { %v264_v53 = vsub.f32 %v262_v1, %v263_v15 }
 0x38e   :  { %v265_v46 = vmax.f32 %v264_v53, 0.0 }
 0x390   :  { %v267_v0 = vadd.f32 1e-05, %v265_v46 }
 0x392   :  { %1671 = vrsqrt.f32 %v267_v0 }
 0x397   :  { %v1557_v58 = vpop.xlane.xlu1 %1556 }
 0x398   :  { %v1567_v18 = vmul.f32 0.001953125, %v1557_v58 }
 0x399   :  { %v1566_v10 = vpop.xlane.xlu0 %1565 }
 0x39a   :  { %v1569_v4 = vmul.f32 %v1567_v18, %v1567_v18  ;;  %v1568_v52 = vmul.f32 0.001953125, %v1566_v10 }
 0x39c   :  { %v1570_v17 = vsub.f32 %v1568_v52, %v1569_v4 }
 0x39e   :  { %v1571_v12 = vmax.f32 %v1570_v17, 0.0 }
 0x39f   :  { %v1672_v35 = vpop.eup %1671 }
 0x3a0   :  { %v1573_v39 = vadd.f32 1e-05, %v1571_v12  ;;  %v269_v60 = vmul.f32 %v1672_v35, %v266_v37 }
 0x3a2   :  { %1673 = vrsqrt.f32 %v1573_v39  ;;  %275 = vperm.xlu1 %1656, %v269_v60   ;;  %v271_v56 = vmul.f32 %v269_v60, %v261_v47 }
 0x3a4   :  { %v272_v45 = vsub.f32 %v270_v5, %v271_v56 }
 0x3a6   :  { %284 = vperm.xlu1 %1656, %v272_v45  }
 0x3af   :  { %v1674_v13 = vpop.eup %1673 }
 0x3b0   :  { %v1575_v8 = vmul.f32 %v1674_v13, %v1572_v21 }
 0x3b2   :  { %1581 = vperm.xlu0 %1655, %v1575_v8   ;;  %v1577_v44 = vmul.f32 %v1575_v8, %v1567_v18 }
 0x3b4   :  { %v1578_v25 = vsub.f32 %v1576_v26, %v1577_v44 }
 0x3b6   :  { %1590 = vperm.xlu1 %1656, %v1578_v25  }
 0x41d   :  { %v276_v7 = vpop.permute.xlu1 %275 }
 0x41e   :  { %v278_v24 = vmul.f32 %v276_v7, %v2914_v51  ;;  %v279_v40 = vmul.f32 %v276_v7, %v2916_v50  ;;  %v280_v62 = vmul.f32 %v276_v7, %v2920_v54  ;;  %v281_v19 = vmul.f32 %v276_v7, %v2922_v6 }
 0x421   :  { %v285_v48 = vpop.permute.xlu1 %284 }
 0x422   :  { %v287_v55 = vadd.f32 %v285_v48, %v278_v24  ;;  %v288_v16 = vadd.f32 %v285_v48, %v279_v40  ;;  %v289_v42 = vadd.f32 %v285_v48, %v280_v62  ;;  %v290_v38 = vadd.f32 %v285_v48, %v281_v19 }
 0x42d   :  { %v1582_v34 = vpop.permute.xlu0 %1581 }
 0x42e   :  { %v1584_v23 = vmul.f32 %v1582_v34, %v1549_v41  ;;  %v1585_v36 = vmul.f32 %v1582_v34, %v1550_v33  ;;  %v1586_v3 = vmul.f32 %v1582_v34, %v1551_v32  ;;  %v1587_v30 = vmul.f32 %v1582_v34, %v1552_v20 }
 0x431   :  { %v1591_v2 = vpop.permute.xlu1 %1590 }
 0x432   :  { %v1593_v59 = vadd.f32 %v1591_v2, %v1584_v23  ;;  %v1594_v29 = vadd.f32 %v1591_v2, %v1585_v36  ;;  %v1595_v49 = vadd.f32 %v1591_v2, %v1586_v3  ;;  %v1596_v61 = vadd.f32 %v1591_v2, %v1587_v30 }
 0x434   :  { %v1597_v51 = vadd.f32 %v1593_v59, %v287_v55  ;;  %v1598_v31 = vadd.f32 %v1594_v29, %v288_v16  ;;  %v1599_v50 = vadd.f32 %v1595_v49, %v289_v42  ;;  %v1600_v57 = vadd.f32 %v1596_v61, %v290_v38 }
 0x436   :  { %1601 = vst [vmem:[%s3019_s13] sm:$0xff] %v1597_v51  ;;  %1602 = vst [vmem:[%s3019_s13 + $0x8] sm:$0xff] %v1598_v31 }
 0x437   :  { %1603 = vst [vmem:[%s3019_s13 + $0x10] sm:$0xff] %v1599_v50  ;;  %1604 = vst [vmem:[%s3019_s13 + $0x18] sm:$0xff] %v1600_v57 }

</bundles_post_ra>
